<compile_context>
chip_gen: v5e
topology: v5e:2x2
jax: 0.10.0
libtpu: 0.0.40
codegen_flags: <defaults>
</compile_context>

<pallas_src>
import functools

import numpy as np
import jax
import jax.numpy as jnp
from jax.experimental import pallas as pl
from jax.experimental.pallas import tpu as pltpu


def _pi_kernel(pk_ref, o_ref, *, res0, res1, sigma):
    """Compute GB persistence images in one grid step.

    pk_ref: (2, K, GB) f32 -- row 0: births, row 1: effective weight
                              (== persistence if the point contributes, else 0)
    o_ref:  (res0, res1, GB) f32 -- diagram index lane-dense on the last axis
    """
    births = pk_ref[0]                   # (K, GB)
    ws = pk_ref[1]                       # (K, GB)
    k_max, gb = births.shape

    # Pre-scaled coordinates: exp(-((x-b)^2+(y-p)^2)/(2*sigma^2))
    #   = exp(-(s*x - s*b)^2) * exp(-(s*y - s*p)^2),  s = 1/(sqrt(2)*sigma).
    s = float(1.0 / (np.sqrt(2.0) * float(sigma)))
    x_step = float(1.0 / (res0 - 1)) if res0 > 1 else 0.0   # linspace(0, 1, res0)
    y_step = float(1.0 / (res1 - 1)) if res1 > 1 else 0.0
    # In-kernel iota (no captured array constants), hoisted out of the point loop.
    xs_c = (jax.lax.broadcasted_iota(jnp.int32, (res0, gb), 0).astype(jnp.float32)
            * np.float32(x_step * s))                        # (res0, GB), scaled
    ys_c = (jax.lax.broadcasted_iota(jnp.int32, (res1, gb), 0).astype(jnp.float32)
            * np.float32(y_step * s))                        # (res1, GB), scaled

    def point_term(p):
        b_p = births[p:p + 1] * np.float32(s)   # (1, GB) scaled birth
        w_p = ws[p:p + 1]                       # (1, GB) effective weight
        y_p = w_p * np.float32(s)               # scaled persistence coordinate
        dx = xs_c - b_p                         # (res0, GB)
        ax = jnp.exp(-(dx * dx)) * w_p          # weight folded into the x factor
        dy = ys_c - y_p                         # (res1, GB)
        by = jnp.exp(-(dy * dy))
        return ax[:, None, :] * by[None, :, :]  # (res0, res1, GB)

    # K <= 10 after compaction, so a static unroll is fine (lax.fori_loop would be
    # preferable only if the point axis were large).
    acc = point_term(0)
    for p in range(1, k_max):
        acc = acc + point_term(p)
    o_ref[...] = acc


def persistence_image_forward(persistence_diagrams, resolution=(10, 10), sigma=0.2):
    """JAX/Pallas port of PersistenceImageLayer.forward.

    persistence_diagrams: [B, D, P, 2] -> returns [B, D, R0, R1] float32.
    """
    B, D, P, _ = persistence_diagrams.shape
    R0, R1 = resolution
    Dp = min(2, D)                                    # only the first min(2, D) dims

    d = persistence_diagrams[:, :Dp].astype(jnp.float32)   # [B, Dp, P, 2]
    births = d[..., 0]
    deaths = d[..., 1]
    pers = deaths - births                                  # = weight_function(points)

    # --- selection + compaction glue (matches torch masking + topk semantics) ---
    nonzero = jnp.logical_not((births == 0.0) & (deaths == 0.0))   # ~all(row == 0)
    K = min(10, P)
    # top-K by persistence among non-zero rows; lax.top_k breaks ties toward lower
    # index, matching the stable-argsort reference.  Rows selected only to fill K
    # when fewer than K points are non-zero get weight 0 below.
    key = jnp.where(nonzero, pers, -jnp.inf)
    _, idx = jax.lax.top_k(key, K)                                  # [B, Dp, K]
    sel_b = jnp.take_along_axis(births, idx, axis=-1)
    sel_p = jnp.take_along_axis(pers, idx, axis=-1)
    sel_nz = jnp.take_along_axis(nonzero, idx, axis=-1)
    # point contributes persistence * Gaussian only if non-zero and persistence > 0
    w = jnp.where(sel_nz & (sel_p > 0.0), sel_p, 0.0)               # [B, Dp, K]

    # --- pack inputs, diagram index on the lane axis ---
    G = B * Dp
    packed = jnp.stack([sel_b.reshape(G, K).T, w.reshape(G, K).T], axis=0)  # (2, K, G)

    GB = 128                                     # block of diagrams (vreg-pressure cap)
    G_pad = GB * (-(-G // GB))
    if G_pad != G:
        packed = jnp.pad(packed, ((0, 0), (0, 0), (0, G_pad - G)))

    kern = functools.partial(_pi_kernel, res0=R0, res1=R1, sigma=sigma)
    out = pl.pallas_call(
        kern,
        out_shape=jax.ShapeDtypeStruct((R0, R1, G_pad), jnp.float32),
        grid=(G_pad // GB,),
        in_specs=[pl.BlockSpec((2, K, GB), lambda g: (0, 0, g))],     # one DMA per step
        out_specs=pl.BlockSpec((R0, R1, GB), lambda g: (0, 0, g)),    # lane-dense store
        compiler_params=pltpu.CompilerParams(dimension_semantics=("parallel",)),
    )(packed)

    imgs = jnp.transpose(out[:, :, :G], (2, 0, 1)).reshape(B, Dp, R0, R1)
    if D > Dp:   # dims >= 2 are filled with zeros, as in the PyTorch module
        imgs = jnp.concatenate(
            [imgs, jnp.zeros((B, D - Dp, R0, R1), jnp.float32)], axis=1)
    return imgs


def _ref_forward(diags, resolution=(10, 10), sigma=0.2):
    """NumPy reference mirroring the PyTorch module exactly."""
    B, D, P, _ = diags.shape
    R0, R1 = resolution
    out = np.zeros((B, D, R0, R1), np.float32)
    x = np.linspace(0.0, 1.0, R0)
    y = np.linspace(0.0, 1.0, R1)
    xx, yy = np.meshgrid(x, y, indexing="ij")
    for i in range(B):
        for dim in range(min(2, D)):
            diagram = diags[i, dim]
            mask = ~np.all(diagram == 0, axis=1)
            pts = diagram[mask]
            if len(pts) == 0:
                continue
            weights = pts[:, 1] - pts[:, 0]
            births = pts[:, 0]
            deaths = pts[:, 1]
            mp = min(10, len(births))
            if len(births) > mp:
                persistence = deaths - births
                sel = np.argsort(-persistence, kind="stable")[:mp]
                births, deaths, weights = births[sel], deaths[sel], weights[sel]
            img = np.zeros((R0, R1), np.float32)
            for k in range(len(births)):
                pk = deaths[k] - births[k]
                if pk > 0:
                    g = np.exp(-((xx - births[k]) ** 2 + (yy - pk) ** 2) / (2 * sigma ** 2))
                    img += (g * weights[k]).astype(np.float32)
            out[i, dim] = img
    return out


if __name__ == "__main__":
    B, D, P = 2, 3, 16                      # [batch, num_dimensions, max_points, 2]
    key = jax.random.PRNGKey(0)
    k1, k2, k3 = jax.random.split(key, 3)
    births = jax.random.uniform(k1, (B, D, P), minval=0.0, maxval=0.8)
    deaths = births + jax.random.uniform(k2, (B, D, P), minval=-0.1, maxval=0.5)
    diag = jnp.stack([births, deaths], axis=-1)
    keep = jax.random.uniform(k3, (B, D, P, 1)) < 0.85     # some all-zero rows
    diag = jnp.where(keep, diag, 0.0).astype(jnp.float32)

    out = persistence_image_forward(diag, resolution=(10, 10), sigma=0.2)
    out = jax.block_until_ready(out)

    ref = _ref_forward(np.asarray(diag), resolution=(10, 10), sigma=0.2)
    assert out.shape == (B, D, 10, 10) and out.dtype == jnp.float32
    np.testing.assert_allclose(np.asarray(out), ref, rtol=1e-2, atol=1e-3)
    print("KERNEL_OK")
</pallas_src>

<mosaic_0001>
module attributes {stable_mosaic.version = 11 : i64} {
  func.func @_pi_kernel(%arg0: i32, %arg1: memref<2x10x128xf32, #tpu.memory_space<vmem>>, %arg2: memref<10x10x128xf32, #tpu.memory_space<vmem>>) attributes {dimension_semantics = [#tpu.dimension_semantics<parallel>], iteration_bounds = array<i64: 1>, scalar_prefetch = 0 : i64, scratch_operands = 0 : i64, tpu.core_type = #tpu.core_type<tc>, window_params = [{transform_indices = @transform_0, window_bounds = array<i64: 2, 10, 128>}, {transform_indices = @transform_1, window_bounds = array<i64: 10, 10, 128>}]} {
    %c0 = arith.constant 0 : index
    %c0_0 = arith.constant 0 : index
    %c0_1 = arith.constant 0 : index
    %0 = vector.load %arg1[%c0, %c0_0, %c0_1] : memref<2x10x128xf32, #tpu.memory_space<vmem>>, vector<1x10x128xf32>
    %1 = vector.shape_cast %0 : vector<1x10x128xf32> to vector<10x128xf32>
    %c1 = arith.constant 1 : index
    %c0_2 = arith.constant 0 : index
    %c0_3 = arith.constant 0 : index
    %2 = vector.load %arg1[%c1, %c0_2, %c0_3] : memref<2x10x128xf32, #tpu.memory_space<vmem>>, vector<1x10x128xf32>
    %3 = vector.shape_cast %2 : vector<1x10x128xf32> to vector<10x128xf32>
    %4 = tpu.iota {dimensions = array<i32: 0>} : vector<10x128xi32>
    %5 = arith.sitofp %4 : vector<10x128xi32> to vector<10x128xf32>
    %cst = arith.constant 0.392837107 : f32
    %6 = vector.broadcast %cst : f32 to vector<10x128xf32>
    %7 = arith.mulf %5, %6 : vector<10x128xf32>
    %8 = tpu.iota {dimensions = array<i32: 0>} : vector<10x128xi32>
    %9 = arith.sitofp %8 : vector<10x128xi32> to vector<10x128xf32>
    %cst_4 = arith.constant 0.392837107 : f32
    %10 = vector.broadcast %cst_4 : f32 to vector<10x128xf32>
    %11 = arith.mulf %9, %10 : vector<10x128xf32>
    %12 = vector.extract_strided_slice %1 {offsets = [0, 0], sizes = [1, 128], strides = [1, 1]} : vector<10x128xf32> to vector<1x128xf32>
    %cst_5 = arith.constant 3.53553391 : f32
    %13 = vector.broadcast %cst_5 : f32 to vector<1x128xf32>
    %14 = arith.mulf %12, %13 : vector<1x128xf32>
    %15 = vector.extract_strided_slice %3 {offsets = [0, 0], sizes = [1, 128], strides = [1, 1]} : vector<10x128xf32> to vector<1x128xf32>
    %cst_6 = arith.constant 3.53553391 : f32
    %16 = vector.broadcast %cst_6 : f32 to vector<1x128xf32>
    %17 = arith.mulf %15, %16 : vector<1x128xf32>
    %18 = vector.broadcast %14 : vector<1x128xf32> to vector<10x128xf32>
    %19 = arith.subf %7, %18 : vector<10x128xf32>
    %20 = arith.mulf %19, %19 : vector<10x128xf32>
    %cst_7 = arith.constant 0.000000e+00 : f32
    %21 = vector.broadcast %cst_7 : f32 to vector<10x128xf32>
    %22 = arith.subf %21, %20 : vector<10x128xf32>
    %23 = math.exp %22 : vector<10x128xf32>
    %24 = vector.broadcast %15 : vector<1x128xf32> to vector<10x128xf32>
    %25 = arith.mulf %23, %24 : vector<10x128xf32>
    %26 = vector.broadcast %17 : vector<1x128xf32> to vector<10x128xf32>
    %27 = arith.subf %11, %26 : vector<10x128xf32>
    %28 = arith.mulf %27, %27 : vector<10x128xf32>
    %cst_8 = arith.constant 0.000000e+00 : f32
    %29 = vector.broadcast %cst_8 : f32 to vector<10x128xf32>
    %30 = arith.subf %29, %28 : vector<10x128xf32>
    %31 = math.exp %30 : vector<10x128xf32>
    %32 = vector.shape_cast %25 : vector<10x128xf32> to vector<10x1x128xf32>
    %33 = vector.shape_cast %31 : vector<10x128xf32> to vector<1x10x128xf32>
    %34 = vector.broadcast %32 : vector<10x1x128xf32> to vector<10x10x128xf32>
    %35 = vector.broadcast %33 : vector<1x10x128xf32> to vector<10x10x128xf32>
    %36 = arith.mulf %34, %35 : vector<10x10x128xf32>
    %37 = vector.extract_strided_slice %1 {offsets = [1, 0], sizes = [1, 128], strides = [1, 1]} : vector<10x128xf32> to vector<1x128xf32>
    %cst_9 = arith.constant 3.53553391 : f32
    %38 = vector.broadcast %cst_9 : f32 to vector<1x128xf32>
    %39 = arith.mulf %37, %38 : vector<1x128xf32>
    %40 = vector.extract_strided_slice %3 {offsets = [1, 0], sizes = [1, 128], strides = [1, 1]} : vector<10x128xf32> to vector<1x128xf32>
    %cst_10 = arith.constant 3.53553391 : f32
    %41 = vector.broadcast %cst_10 : f32 to vector<1x128xf32>
    %42 = arith.mulf %40, %41 : vector<1x128xf32>
    %43 = vector.broadcast %39 : vector<1x128xf32> to vector<10x128xf32>
    %44 = arith.subf %7, %43 : vector<10x128xf32>
    %45 = arith.mulf %44, %44 : vector<10x128xf32>
    %cst_11 = arith.constant 0.000000e+00 : f32
    %46 = vector.broadcast %cst_11 : f32 to vector<10x128xf32>
    %47 = arith.subf %46, %45 : vector<10x128xf32>
    %48 = math.exp %47 : vector<10x128xf32>
    %49 = vector.broadcast %40 : vector<1x128xf32> to vector<10x128xf32>
    %50 = arith.mulf %48, %49 : vector<10x128xf32>
    %51 = vector.broadcast %42 : vector<1x128xf32> to vector<10x128xf32>
    %52 = arith.subf %11, %51 : vector<10x128xf32>
    %53 = arith.mulf %52, %52 : vector<10x128xf32>
    %cst_12 = arith.constant 0.000000e+00 : f32
    %54 = vector.broadcast %cst_12 : f32 to vector<10x128xf32>
    %55 = arith.subf %54, %53 : vector<10x128xf32>
    %56 = math.exp %55 : vector<10x128xf32>
    %57 = vector.shape_cast %50 : vector<10x128xf32> to vector<10x1x128xf32>
    %58 = vector.shape_cast %56 : vector<10x128xf32> to vector<1x10x128xf32>
    %59 = vector.broadcast %57 : vector<10x1x128xf32> to vector<10x10x128xf32>
    %60 = vector.broadcast %58 : vector<1x10x128xf32> to vector<10x10x128xf32>
    %61 = arith.mulf %59, %60 : vector<10x10x128xf32>
    %62 = arith.addf %36, %61 : vector<10x10x128xf32>
    %63 = vector.extract_strided_slice %1 {offsets = [2, 0], sizes = [1, 128], strides = [1, 1]} : vector<10x128xf32> to vector<1x128xf32>
    %cst_13 = arith.constant 3.53553391 : f32
    %64 = vector.broadcast %cst_13 : f32 to vector<1x128xf32>
    %65 = arith.mulf %63, %64 : vector<1x128xf32>
    %66 = vector.extract_strided_slice %3 {offsets = [2, 0], sizes = [1, 128], strides = [1, 1]} : vector<10x128xf32> to vector<1x128xf32>
    %cst_14 = arith.constant 3.53553391 : f32
    %67 = vector.broadcast %cst_14 : f32 to vector<1x128xf32>
    %68 = arith.mulf %66, %67 : vector<1x128xf32>
    %69 = vector.broadcast %65 : vector<1x128xf32> to vector<10x128xf32>
    %70 = arith.subf %7, %69 : vector<10x128xf32>
    %71 = arith.mulf %70, %70 : vector<10x128xf32>
    %cst_15 = arith.constant 0.000000e+00 : f32
    %72 = vector.broadcast %cst_15 : f32 to vector<10x128xf32>
    %73 = arith.subf %72, %71 : vector<10x128xf32>
    %74 = math.exp %73 : vector<10x128xf32>
    %75 = vector.broadcast %66 : vector<1x128xf32> to vector<10x128xf32>
    %76 = arith.mulf %74, %75 : vector<10x128xf32>
    %77 = vector.broadcast %68 : vector<1x128xf32> to vector<10x128xf32>
    %78 = arith.subf %11, %77 : vector<10x128xf32>
    %79 = arith.mulf %78, %78 : vector<10x128xf32>
    %cst_16 = arith.constant 0.000000e+00 : f32
    %80 = vector.broadcast %cst_16 : f32 to vector<10x128xf32>
    %81 = arith.subf %80, %79 : vector<10x128xf32>
    %82 = math.exp %81 : vector<10x128xf32>
    %83 = vector.shape_cast %76 : vector<10x128xf32> to vector<10x1x128xf32>
    %84 = vector.shape_cast %82 : vector<10x128xf32> to vector<1x10x128xf32>
    %85 = vector.broadcast %83 : vector<10x1x128xf32> to vector<10x10x128xf32>
    %86 = vector.broadcast %84 : vector<1x10x128xf32> to vector<10x10x128xf32>
    %87 = arith.mulf %85, %86 : vector<10x10x128xf32>
    %88 = arith.addf %62, %87 : vector<10x10x128xf32>
    %89 = vector.extract_strided_slice %1 {offsets = [3, 0], sizes = [1, 128], strides = [1, 1]} : vector<10x128xf32> to vector<1x128xf32>
    %cst_17 = arith.constant 3.53553391 : f32
    %90 = vector.broadcast %cst_17 : f32 to vector<1x128xf32>
    %91 = arith.mulf %89, %90 : vector<1x128xf32>
    %92 = vector.extract_strided_slice %3 {offsets = [3, 0], sizes = [1, 128], strides = [1, 1]} : vector<10x128xf32> to vector<1x128xf32>
    %cst_18 = arith.constant 3.53553391 : f32
    %93 = vector.broadcast %cst_18 : f32 to vector<1x128xf32>
    %94 = arith.mulf %92, %93 : vector<1x128xf32>
    %95 = vector.broadcast %91 : vector<1x128xf32> to vector<10x128xf32>
    %96 = arith.subf %7, %95 : vector<10x128xf32>
    %97 = arith.mulf %96, %96 : vector<10x128xf32>
    %cst_19 = arith.constant 0.000000e+00 : f32
    %98 = vector.broadcast %cst_19 : f32 to vector<10x128xf32>
    %99 = arith.subf %98, %97 : vector<10x128xf32>
    %100 = math.exp %99 : vector<10x128xf32>
    %101 = vector.broadcast %92 : vector<1x128xf32> to vector<10x128xf32>
    %102 = arith.mulf %100, %101 : vector<10x128xf32>
    %103 = vector.broadcast %94 : vector<1x128xf32> to vector<10x128xf32>
    %104 = arith.subf %11, %103 : vector<10x128xf32>
    %105 = arith.mulf %104, %104 : vector<10x128xf32>
    %cst_20 = arith.constant 0.000000e+00 : f32
    %106 = vector.broadcast %cst_20 : f32 to vector<10x128xf32>
    %107 = arith.subf %106, %105 : vector<10x128xf32>
    %108 = math.exp %107 : vector<10x128xf32>
    %109 = vector.shape_cast %102 : vector<10x128xf32> to vector<10x1x128xf32>
    %110 = vector.shape_cast %108 : vector<10x128xf32> to vector<1x10x128xf32>
    %111 = vector.broadcast %109 : vector<10x1x128xf32> to vector<10x10x128xf32>
    %112 = vector.broadcast %110 : vector<1x10x128xf32> to vector<10x10x128xf32>
    %113 = arith.mulf %111, %112 : vector<10x10x128xf32>
    %114 = arith.addf %88, %113 : vector<10x10x128xf32>
    %115 = vector.extract_strided_slice %1 {offsets = [4, 0], sizes = [1, 128], strides = [1, 1]} : vector<10x128xf32> to vector<1x128xf32>
    %cst_21 = arith.constant 3.53553391 : f32
    %116 = vector.broadcast %cst_21 : f32 to vector<1x128xf32>
    %117 = arith.mulf %115, %116 : vector<1x128xf32>
    %118 = vector.extract_strided_slice %3 {offsets = [4, 0], sizes = [1, 128], strides = [1, 1]} : vector<10x128xf32> to vector<1x128xf32>
    %cst_22 = arith.constant 3.53553391 : f32
    %119 = vector.broadcast %cst_22 : f32 to vector<1x128xf32>
    %120 = arith.mulf %118, %119 : vector<1x128xf32>
    %121 = vector.broadcast %117 : vector<1x128xf32> to vector<10x128xf32>
    %122 = arith.subf %7, %121 : vector<10x128xf32>
    %123 = arith.mulf %122, %122 : vector<10x128xf32>
    %cst_23 = arith.constant 0.000000e+00 : f32
    %124 = vector.broadcast %cst_23 : f32 to vector<10x128xf32>
    %125 = arith.subf %124, %123 : vector<10x128xf32>
    %126 = math.exp %125 : vector<10x128xf32>
    %127 = vector.broadcast %118 : vector<1x128xf32> to vector<10x128xf32>
    %128 = arith.mulf %126, %127 : vector<10x128xf32>
    %129 = vector.broadcast %120 : vector<1x128xf32> to vector<10x128xf32>
    %130 = arith.subf %11, %129 : vector<10x128xf32>
    %131 = arith.mulf %130, %130 : vector<10x128xf32>
    %cst_24 = arith.constant 0.000000e+00 : f32
    %132 = vector.broadcast %cst_24 : f32 to vector<10x128xf32>
    %133 = arith.subf %132, %131 : vector<10x128xf32>
    %134 = math.exp %133 : vector<10x128xf32>
    %135 = vector.shape_cast %128 : vector<10x128xf32> to vector<10x1x128xf32>
    %136 = vector.shape_cast %134 : vector<10x128xf32> to vector<1x10x128xf32>
    %137 = vector.broadcast %135 : vector<10x1x128xf32> to vector<10x10x128xf32>
    %138 = vector.broadcast %136 : vector<1x10x128xf32> to vector<10x10x128xf32>
    %139 = arith.mulf %137, %138 : vector<10x10x128xf32>
    %140 = arith.addf %114, %139 : vector<10x10x128xf32>
    %141 = vector.extract_strided_slice %1 {offsets = [5, 0], sizes = [1, 128], strides = [1, 1]} : vector<10x128xf32> to vector<1x128xf32>
    %cst_25 = arith.constant 3.53553391 : f32
    %142 = vector.broadcast %cst_25 : f32 to vector<1x128xf32>
    %143 = arith.mulf %141, %142 : vector<1x128xf32>
    %144 = vector.extract_strided_slice %3 {offsets = [5, 0], sizes = [1, 128], strides = [1, 1]} : vector<10x128xf32> to vector<1x128xf32>
    %cst_26 = arith.constant 3.53553391 : f32
    %145 = vector.broadcast %cst_26 : f32 to vector<1x128xf32>
    %146 = arith.mulf %144, %145 : vector<1x128xf32>
    %147 = vector.broadcast %143 : vector<1x128xf32> to vector<10x128xf32>
    %148 = arith.subf %7, %147 : vector<10x128xf32>
    %149 = arith.mulf %148, %148 : vector<10x128xf32>
    %cst_27 = arith.constant 0.000000e+00 : f32
    %150 = vector.broadcast %cst_27 : f32 to vector<10x128xf32>
    %151 = arith.subf %150, %149 : vector<10x128xf32>
    %152 = math.exp %151 : vector<10x128xf32>
    %153 = vector.broadcast %144 : vector<1x128xf32> to vector<10x128xf32>
    %154 = arith.mulf %152, %153 : vector<10x128xf32>
    %155 = vector.broadcast %146 : vector<1x128xf32> to vector<10x128xf32>
    %156 = arith.subf %11, %155 : vector<10x128xf32>
    %157 = arith.mulf %156, %156 : vector<10x128xf32>
    %cst_28 = arith.constant 0.000000e+00 : f32
    %158 = vector.broadcast %cst_28 : f32 to vector<10x128xf32>
    %159 = arith.subf %158, %157 : vector<10x128xf32>
    %160 = math.exp %159 : vector<10x128xf32>
    %161 = vector.shape_cast %154 : vector<10x128xf32> to vector<10x1x128xf32>
    %162 = vector.shape_cast %160 : vector<10x128xf32> to vector<1x10x128xf32>
    %163 = vector.broadcast %161 : vector<10x1x128xf32> to vector<10x10x128xf32>
    %164 = vector.broadcast %162 : vector<1x10x128xf32> to vector<10x10x128xf32>
    %165 = arith.mulf %163, %164 : vector<10x10x128xf32>
    %166 = arith.addf %140, %165 : vector<10x10x128xf32>
    %167 = vector.extract_strided_slice %1 {offsets = [6, 0], sizes = [1, 128], strides = [1, 1]} : vector<10x128xf32> to vector<1x128xf32>
    %cst_29 = arith.constant 3.53553391 : f32
    %168 = vector.broadcast %cst_29 : f32 to vector<1x128xf32>
    %169 = arith.mulf %167, %168 : vector<1x128xf32>
    %170 = vector.extract_strided_slice %3 {offsets = [6, 0], sizes = [1, 128], strides = [1, 1]} : vector<10x128xf32> to vector<1x128xf32>
    %cst_30 = arith.constant 3.53553391 : f32
    %171 = vector.broadcast %cst_30 : f32 to vector<1x128xf32>
    %172 = arith.mulf %170, %171 : vector<1x128xf32>
    %173 = vector.broadcast %169 : vector<1x128xf32> to vector<10x128xf32>
    %174 = arith.subf %7, %173 : vector<10x128xf32>
    %175 = arith.mulf %174, %174 : vector<10x128xf32>
    %cst_31 = arith.constant 0.000000e+00 : f32
    %176 = vector.broadcast %cst_31 : f32 to vector<10x128xf32>
    %177 = arith.subf %176, %175 : vector<10x128xf32>
    %178 = math.exp %177 : vector<10x128xf32>
    %179 = vector.broadcast %170 : vector<1x128xf32> to vector<10x128xf32>
    %180 = arith.mulf %178, %179 : vector<10x128xf32>
    %181 = vector.broadcast %172 : vector<1x128xf32> to vector<10x128xf32>
    %182 = arith.subf %11, %181 : vector<10x128xf32>
    %183 = arith.mulf %182, %182 : vector<10x128xf32>
    %cst_32 = arith.constant 0.000000e+00 : f32
    %184 = vector.broadcast %cst_32 : f32 to vector<10x128xf32>
    %185 = arith.subf %184, %183 : vector<10x128xf32>
    %186 = math.exp %185 : vector<10x128xf32>
    %187 = vector.shape_cast %180 : vector<10x128xf32> to vector<10x1x128xf32>
    %188 = vector.shape_cast %186 : vector<10x128xf32> to vector<1x10x128xf32>
    %189 = vector.broadcast %187 : vector<10x1x128xf32> to vector<10x10x128xf32>
    %190 = vector.broadcast %188 : vector<1x10x128xf32> to vector<10x10x128xf32>
    %191 = arith.mulf %189, %190 : vector<10x10x128xf32>
    %192 = arith.addf %166, %191 : vector<10x10x128xf32>
    %193 = vector.extract_strided_slice %1 {offsets = [7, 0], sizes = [1, 128], strides = [1, 1]} : vector<10x128xf32> to vector<1x128xf32>
    %cst_33 = arith.constant 3.53553391 : f32
    %194 = vector.broadcast %cst_33 : f32 to vector<1x128xf32>
    %195 = arith.mulf %193, %194 : vector<1x128xf32>
    %196 = vector.extract_strided_slice %3 {offsets = [7, 0], sizes = [1, 128], strides = [1, 1]} : vector<10x128xf32> to vector<1x128xf32>
    %cst_34 = arith.constant 3.53553391 : f32
    %197 = vector.broadcast %cst_34 : f32 to vector<1x128xf32>
    %198 = arith.mulf %196, %197 : vector<1x128xf32>
    %199 = vector.broadcast %195 : vector<1x128xf32> to vector<10x128xf32>
    %200 = arith.subf %7, %199 : vector<10x128xf32>
    %201 = arith.mulf %200, %200 : vector<10x128xf32>
    %cst_35 = arith.constant 0.000000e+00 : f32
    %202 = vector.broadcast %cst_35 : f32 to vector<10x128xf32>
    %203 = arith.subf %202, %201 : vector<10x128xf32>
    %204 = math.exp %203 : vector<10x128xf32>
    %205 = vector.broadcast %196 : vector<1x128xf32> to vector<10x128xf32>
    %206 = arith.mulf %204, %205 : vector<10x128xf32>
    %207 = vector.broadcast %198 : vector<1x128xf32> to vector<10x128xf32>
    %208 = arith.subf %11, %207 : vector<10x128xf32>
    %209 = arith.mulf %208, %208 : vector<10x128xf32>
    %cst_36 = arith.constant 0.000000e+00 : f32
    %210 = vector.broadcast %cst_36 : f32 to vector<10x128xf32>
    %211 = arith.subf %210, %209 : vector<10x128xf32>
    %212 = math.exp %211 : vector<10x128xf32>
    %213 = vector.shape_cast %206 : vector<10x128xf32> to vector<10x1x128xf32>
    %214 = vector.shape_cast %212 : vector<10x128xf32> to vector<1x10x128xf32>
    %215 = vector.broadcast %213 : vector<10x1x128xf32> to vector<10x10x128xf32>
    %216 = vector.broadcast %214 : vector<1x10x128xf32> to vector<10x10x128xf32>
    %217 = arith.mulf %215, %216 : vector<10x10x128xf32>
    %218 = arith.addf %192, %217 : vector<10x10x128xf32>
    %219 = vector.extract_strided_slice %1 {offsets = [8, 0], sizes = [1, 128], strides = [1, 1]} : vector<10x128xf32> to vector<1x128xf32>
    %cst_37 = arith.constant 3.53553391 : f32
    %220 = vector.broadcast %cst_37 : f32 to vector<1x128xf32>
    %221 = arith.mulf %219, %220 : vector<1x128xf32>
    %222 = vector.extract_strided_slice %3 {offsets = [8, 0], sizes = [1, 128], strides = [1, 1]} : vector<10x128xf32> to vector<1x128xf32>
    %cst_38 = arith.constant 3.53553391 : f32
    %223 = vector.broadcast %cst_38 : f32 to vector<1x128xf32>
    %224 = arith.mulf %222, %223 : vector<1x128xf32>
    %225 = vector.broadcast %221 : vector<1x128xf32> to vector<10x128xf32>
    %226 = arith.subf %7, %225 : vector<10x128xf32>
    %227 = arith.mulf %226, %226 : vector<10x128xf32>
    %cst_39 = arith.constant 0.000000e+00 : f32
    %228 = vector.broadcast %cst_39 : f32 to vector<10x128xf32>
    %229 = arith.subf %228, %227 : vector<10x128xf32>
    %230 = math.exp %229 : vector<10x128xf32>
    %231 = vector.broadcast %222 : vector<1x128xf32> to vector<10x128xf32>
    %232 = arith.mulf %230, %231 : vector<10x128xf32>
    %233 = vector.broadcast %224 : vector<1x128xf32> to vector<10x128xf32>
    %234 = arith.subf %11, %233 : vector<10x128xf32>
    %235 = arith.mulf %234, %234 : vector<10x128xf32>
    %cst_40 = arith.constant 0.000000e+00 : f32
    %236 = vector.broadcast %cst_40 : f32 to vector<10x128xf32>
    %237 = arith.subf %236, %235 : vector<10x128xf32>
    %238 = math.exp %237 : vector<10x128xf32>
    %239 = vector.shape_cast %232 : vector<10x128xf32> to vector<10x1x128xf32>
    %240 = vector.shape_cast %238 : vector<10x128xf32> to vector<1x10x128xf32>
    %241 = vector.broadcast %239 : vector<10x1x128xf32> to vector<10x10x128xf32>
    %242 = vector.broadcast %240 : vector<1x10x128xf32> to vector<10x10x128xf32>
    %243 = arith.mulf %241, %242 : vector<10x10x128xf32>
    %244 = arith.addf %218, %243 : vector<10x10x128xf32>
    %245 = vector.extract_strided_slice %1 {offsets = [9, 0], sizes = [1, 128], strides = [1, 1]} : vector<10x128xf32> to vector<1x128xf32>
    %cst_41 = arith.constant 3.53553391 : f32
    %246 = vector.broadcast %cst_41 : f32 to vector<1x128xf32>
    %247 = arith.mulf %245, %246 : vector<1x128xf32>
    %248 = vector.extract_strided_slice %3 {offsets = [9, 0], sizes = [1, 128], strides = [1, 1]} : vector<10x128xf32> to vector<1x128xf32>
    %cst_42 = arith.constant 3.53553391 : f32
    %249 = vector.broadcast %cst_42 : f32 to vector<1x128xf32>
    %250 = arith.mulf %248, %249 : vector<1x128xf32>
    %251 = vector.broadcast %247 : vector<1x128xf32> to vector<10x128xf32>
    %252 = arith.subf %7, %251 : vector<10x128xf32>
    %253 = arith.mulf %252, %252 : vector<10x128xf32>
    %cst_43 = arith.constant 0.000000e+00 : f32
    %254 = vector.broadcast %cst_43 : f32 to vector<10x128xf32>
    %255 = arith.subf %254, %253 : vector<10x128xf32>
    %256 = math.exp %255 : vector<10x128xf32>
    %257 = vector.broadcast %248 : vector<1x128xf32> to vector<10x128xf32>
    %258 = arith.mulf %256, %257 : vector<10x128xf32>
    %259 = vector.broadcast %250 : vector<1x128xf32> to vector<10x128xf32>
    %260 = arith.subf %11, %259 : vector<10x128xf32>
    %261 = arith.mulf %260, %260 : vector<10x128xf32>
    %cst_44 = arith.constant 0.000000e+00 : f32
    %262 = vector.broadcast %cst_44 : f32 to vector<10x128xf32>
    %263 = arith.subf %262, %261 : vector<10x128xf32>
    %264 = math.exp %263 : vector<10x128xf32>
    %265 = vector.shape_cast %258 : vector<10x128xf32> to vector<10x1x128xf32>
    %266 = vector.shape_cast %264 : vector<10x128xf32> to vector<1x10x128xf32>
    %267 = vector.broadcast %265 : vector<10x1x128xf32> to vector<10x10x128xf32>
    %268 = vector.broadcast %266 : vector<1x10x128xf32> to vector<10x10x128xf32>
    %269 = arith.mulf %267, %268 : vector<10x10x128xf32>
    %270 = arith.addf %244, %269 : vector<10x10x128xf32>
    %c0_45 = arith.constant 0 : index
    %c0_46 = arith.constant 0 : index
    %c0_47 = arith.constant 0 : index
    %271 = vector.load %arg2[%c0_45, %c0_46, %c0_47] : memref<10x10x128xf32, #tpu.memory_space<vmem>>, vector<10x10x128xf32>
    tpu.vector_store %arg2[%c0_45, %c0_46, %c0_47], %270 {strides = array<i32>} : memref<10x10x128xf32, #tpu.memory_space<vmem>>, vector<10x10x128xf32>,
    return
  }
  func.func @transform_0(%arg0: i32) -> (i32, i32, i32) {
    %c0_i32 = arith.constant 0 : i32
    %c0_i32_0 = arith.constant 0 : i32
    %c0_i32_1 = arith.constant 0 : i32
    return %c0_i32, %c0_i32_0, %arg0 : i32, i32, i32
  }
  func.func @transform_1(%arg0: i32) -> (i32, i32, i32) {
    %c0_i32 = arith.constant 0 : i32
    %c0_i32_0 = arith.constant 0 : i32
    %c0_i32_1 = arith.constant 0 : i32
    return %c0_i32, %c0_i32_0, %arg0 : i32, i32, i32
  }
}

</mosaic_0001>

<bundles_post_ra>
// kernel: tpu_custom_call.1
= control target key start
LH: loop header
LB: loop body
LE: loop exit
PB: predicated region body
PF: predicated region fallthrough
CT: control target
= control target key end

     0   :  { %v14_v2 = vlaneseq  ;;  %s1676_s0 = inlined_call_operand.vmem [shape: f32[2,10,128], index: 0, kind: input, shape index: {}]   ;;  %s1677_s1 = inlined_call_operand.hbm [shape: f32[10,10,128], index: 1, kind: output, shape index: {}]  }
   0x1   :  { %v9_v0 = vld [vmem:[%s1676_s0] sm:$0xff]  ;;  %v1123_v1 = vld [vmem:[%s1676_s0 + $0x10] sm:$0xff] }
   0x2   :  { %1716 = vst [vmem:[#allocation5_spill] sm:$0xff] %v1123_v1  ;;  %v1125_v3 = vmul.f32 3.535534, %v9_v0  ;;  %v1128_v4 = vmul.f32 3.535534, %v1123_v1  ;;  %v15_v5 = vshrl.u32 %v14_v2, 7 }
   0x3   :  { %v1684_v6 = vperm.slane %v1123_v1, 0  ;;  %v1683_v7 = vperm.slane %v1123_v1, 1  ;;  %v1681_v8 = vperm.slane %v1123_v1, 2 }
   0x4   :  { %1717 = vst [vmem:[#allocation6_spill] sm:$0xff] %v1125_v3 }
   0x5   :  { %6 = vsyncpa [#allocation3], 0  ;;  %v1697_v9 = vperm.slane %v1125_v3, 0  ;;  %v37_v10 = vperm.slane %v1128_v4, 0  ;;  %v1696_v11 = vperm.slane %v1125_v3, 1  ;;  %v112_v12 = vperm.slane %v1128_v4, 1 }
   0x6   :  { %v16_v13 = vadd.s32 8, %v15_v5  ;;  %v17_v14 = vcvt.s32.f32 %v15_v5  ;;  %v1695_v15 = vperm.slane %v1125_v3, 2  ;;  %v207_v16 = vperm.slane %v1128_v4, 2  ;;  %s981_s17 = sshll.u32 %s1677_s1, 4  ;;  %s1105_s18 = smov 128   ;;  %s982_s17 = int_to_ptr.hbm [resolvable:$true] %s981_s17 }
   0x7   :  { %v1694_v17 = vperm.slane %v1125_v3, 3  ;;  %v1680_v18 = vperm.slane %v1123_v1, 3  ;;  %v302_v19 = vperm.slane %v1128_v4, 3  ;;  %v1693_v20 = vperm.slane %v1125_v3, 4  ;;  %s1106_s19 = smov 8  }
   0x8   :  { %v18_v21 = vcvt.s32.f32 %v16_v13  ;;  %v1143_v22 = vmul.f32 0.3928371, %v17_v14  ;;  %v1679_v23 = vperm.slane %v1123_v1, 4  ;;  %v397_v24 = vperm.slane %v1128_v4, 4 }
   0x9   :  { %v1691_v25 = vperm.slane %v1125_v3, 5  ;;  %v1678_v26 = vperm.slane %v1123_v1, 5  ;;  %v492_v27 = vperm.slane %v1128_v4, 5  ;;  %v1690_v28 = vperm.slane %v1125_v3, 6 }
   0xa   :  { %v1151_v29 = vmul.f32 0.3928371, %v18_v21  ;;  %v24_v30 = vsub.f32 %v1143_v22, %v1697_v9  ;;  %v38_v31 = vsub.f32 %v1143_v22, %v37_v10  ;;  %v99_v32 = vsub.f32 %v1143_v22, %v1696_v11 }
   0xb   :  { %v113_v33 = vsub.f32 %v1143_v22, %v112_v12  ;;  %v194_v34 = vsub.f32 %v1143_v22, %v1695_v15  ;;  %v208_v35 = vsub.f32 %v1143_v22, %v207_v16  ;;  %v289_v36 = vsub.f32 %v1143_v22, %v1694_v17 }
   0xc   :  { %1718 = vst [vmem:[#allocation7_spill] sm:$0xff] %v1151_v29  ;;  %v26_v37 = vmul.f32 %v24_v30, %v24_v30  ;;  %v39_v38 = vsub.f32 %v1151_v29, %v37_v10  ;;  %v40_v39 = vmul.f32 %v38_v31, %v38_v31  ;;  %v101_v40 = vmul.f32 %v99_v32, %v99_v32 }
   0xd   :  { %v114_v41 = vsub.f32 %v1151_v29, %v112_v12  ;;  %v115_v42 = vmul.f32 %v113_v33, %v113_v33  ;;  %v196_v43 = vmul.f32 %v194_v34, %v194_v34  ;;  %v209_v44 = vsub.f32 %v1151_v29, %v207_v16 }
   0xe   :  { %v28_v45 = vsub.f32 0.0, %v26_v37  ;;  %v41_v46 = vmul.f32 %v39_v38, %v39_v38  ;;  %v42_v47 = vsub.f32 0.0, %v40_v39  ;;  %v103_v48 = vsub.f32 0.0, %v101_v40 }
   0xf   :  { %v116_v49 = vmul.f32 %v114_v41, %v114_v41  ;;  %v117_v50 = vsub.f32 0.0, %v115_v42  ;;  %v198_v51 = vsub.f32 0.0, %v196_v43  ;;  %v210_v52 = vmul.f32 %v208_v35, %v208_v35 }
  0x10   :  { %v30_v53 = vmul.f32 1.442695, %v28_v45  ;;  %v43_v54 = vsub.f32 0.0, %v41_v46  ;;  %v44_v55 = vmul.f32 1.442695, %v42_v47  ;;  %v211_v56 = vmul.f32 %v209_v44, %v209_v44 }
  0x11   :  { %v105_v57 = vmul.f32 1.442695, %v103_v48  ;;  %v118_v58 = vsub.f32 0.0, %v116_v49  ;;  %v119_v59 = vmul.f32 1.442695, %v117_v50  ;;  %v212_v60 = vsub.f32 0.0, %v210_v52 }
  0x12   :  { %998 = vpow2.f32 %v30_v53  ;;  %v46_v61 = vmul.f32 1.442695, %v43_v54  ;;  %v200_v62 = vmul.f32 1.442695, %v198_v51  ;;  %v213_v63 = vsub.f32 0.0, %v211_v56 }
  0x13   :  { %1000 = vpow2.f32 %v44_v55  ;;  %v121_v0 = vmul.f32 1.442695, %v118_v58  ;;  %v214_v2 = vmul.f32 1.442695, %v212_v60  ;;  %v291_v5 = vmul.f32 %v289_v36, %v289_v36 }
  0x14   :  { %1002 = vpow2.f32 %v46_v61  ;;  %v216_v10 = vmul.f32 1.442695, %v213_v63  ;;  %v303_v12 = vsub.f32 %v1143_v22, %v302_v19  ;;  %v304_v13 = vsub.f32 %v1151_v29, %v302_v19 }
  0x15   :  { %1004 = vpow2.f32 %v105_v57  ;;  %v293_v14 = vsub.f32 0.0, %v291_v5  ;;  %v384_v16 = vsub.f32 %v1143_v22, %v1693_v20  ;;  %v398_v21 = vsub.f32 %v1143_v22, %v397_v24 }
  0x16   :  { %1006 = vpow2.f32 %v119_v59  ;;  %v305_v30 = vmul.f32 %v303_v12, %v303_v12  ;;  %v306_v31 = vmul.f32 %v304_v13, %v304_v13  ;;  %v399_v32 = vsub.f32 %v1151_v29, %v397_v24 }
  0x17   :  { %1008 = vpow2.f32 %v121_v0  ;;  %v295_v33 = vmul.f32 1.442695, %v293_v14  ;;  %v386_v34 = vmul.f32 %v384_v16, %v384_v16  ;;  %v400_v35 = vmul.f32 %v398_v21, %v398_v21 }
  0x18   :  { %v999_v36 = vpop.eup %998  ;;  %1010 = vpow2.f32 %v200_v62  ;;  %v307_v19 = vsub.f32 0.0, %v305_v30  ;;  %v308_v37 = vsub.f32 0.0, %v306_v31  ;;  %v401_v38 = vmul.f32 %v399_v32, %v399_v32 }
  0x19   :  { %v1178_v39 = vpop.eup %1000  ;;  %v1182_v40 = vmul.f32 %v999_v36, %v1684_v6  ;;  %1012 = vpow2.f32 %v214_v2  ;;  %v388_v41 = vsub.f32 0.0, %v386_v34  ;;  %v402_v42 = vsub.f32 0.0, %v400_v35 }
  0x1a   :  { %v1184_v43 = vpop.eup %1002  ;;  %1014 = vpow2.f32 %v216_v10  ;;  %v309_v24 = vmul.f32 1.442695, %v307_v19  ;;  %v311_v44 = vmul.f32 1.442695, %v308_v37  ;;  %v403_v45 = vsub.f32 0.0, %v401_v38 }
  0x1b   :  { %v1005_v46 = vpop.eup %1004  ;;  %v58_v47 = vperm.slane %v1182_v40, 0  ;;  %1016 = vpow2.f32 %v295_v33  ;;  %v390_v48 = vmul.f32 1.442695, %v388_v41  ;;  %v404_v49 = vmul.f32 1.442695, %v402_v42 }
  0x1c   :  { %v1187_v50 = vpop.eup %1006  ;;  %v1191_v51 = vmul.f32 %v1005_v46, %v1683_v7  ;;  %1018 = vpow2.f32 %v309_v24  ;;  %v406_v52 = vmul.f32 1.442695, %v403_v45  ;;  %v479_v53 = vsub.f32 %v1143_v22, %v1691_v25 }
  0x1d   :  { %v1196_v54 = vpop.eup %1008  ;;  %v78_v55 = vmul.f32 %v1178_v39, %v58_v47  ;;  %1020 = vpow2.f32 %v311_v44  ;;  %v493_v56 = vsub.f32 %v1143_v22, %v492_v27  ;;  %v494_v57 = vsub.f32 %v1151_v29, %v492_v27 }
  0x1e   :  { %v1011_v58 = vpop.eup %1010  ;;  %v133_v59 = vperm.slane %v1191_v51, 0  ;;  %1022 = vpow2.f32 %v390_v48  ;;  %v481_v60 = vmul.f32 %v479_v53, %v479_v53  ;;  %v574_v61 = vsub.f32 %v1143_v22, %v1690_v28 }
  0x1f   :  { %v1211_v62 = vpop.eup %1012  ;;  %v1215_v63 = vmul.f32 %v1011_v58, %v1681_v8  ;;  %1024 = vpow2.f32 %v404_v49  ;;  %v495_v0 = vmul.f32 %v493_v56, %v493_v56  ;;  %v496_v2 = vmul.f32 %v494_v57, %v494_v57  ;;  %v1253_v56 = vld [vmem:[%s1676_s0 + $0x18] sm:$0x3] }
  0x20   :  { %v1217_v5 = vpop.eup %1014  ;;  %v153_v27 = vmul.f32 %v1187_v50, %v133_v59  ;;  %1026 = vpow2.f32 %v406_v52  ;;  %v483_v10 = vsub.f32 0.0, %v481_v60  ;;  %v576_v12 = vmul.f32 %v574_v61, %v574_v61  ;;  %1719 = vst [vmem:[#allocation8_spill] sm:$0xff] %v1253_v56 }
  0x21   :  { %v1017_v13 = vpop.eup %1016  ;;  %v228_v14 = vperm.slane %v1215_v63, 0  ;;  %v497_v16 = vsub.f32 0.0, %v495_v0  ;;  %v498_v21 = vsub.f32 0.0, %v496_v2  ;;  %v1682_v30 = vperm.slane %v1123_v1, 6 }
  0x22   :  { %v1224_v31 = vpop.eup %1018  ;;  %v173_v32 = vadd.f32 %v153_v27, %v78_v55  ;;  %v1228_v33 = vmul.f32 %v1017_v13, %v1680_v18  ;;  %v485_v34 = vmul.f32 1.442695, %v483_v10  ;;  %v578_v35 = vsub.f32 0.0, %v576_v12  ;;  %v10_v55 = vld [vmem:[%s1676_s0 + $0x8] sm:$0x3]  ;;  %s1104_s0 = smov [#allocation2]  }
  0x23   :  { %v1230_v36 = vpop.eup %1020  ;;  %v248_v19 = vmul.f32 %v1211_v62, %v228_v14  ;;  %v499_v37 = vmul.f32 1.442695, %v497_v16  ;;  %v501_v38 = vmul.f32 1.442695, %v498_v21  ;;  %v587_v41 = vperm.slane %v1128_v4, 6  ;;  %s979_s14 = sshll.u32 %s1104_s0, 4  ;;  %s980_s14 = int_to_ptr.vmem [resolvable:$true] %s979_s14 }
  0x24   :  { %v1023_v42 = vpop.eup %1022  ;;  %v323_v24 = vperm.slane %v1228_v33, 0  ;;  %1028 = vpow2.f32 %v485_v34  ;;  %v580_v44 = vmul.f32 1.442695, %v578_v35  ;;  %v1689_v45 = vperm.slane %v1125_v3, 7 }
  0x25   :  { %v1238_v46 = vpop.eup %1024  ;;  %v268_v48 = vadd.f32 %v248_v19, %v173_v32  ;;  %v1242_v49 = vmul.f32 %v1023_v42, %v1679_v23  ;;  %1030 = vpow2.f32 %v499_v37  ;;  %v588_v52 = vsub.f32 %v1143_v22, %v587_v41 }
  0x26   :  { %v1245_v53 = vpop.eup %1026  ;;  %v343_v57 = vmul.f32 %v1224_v31, %v323_v24  ;;  %1032 = vpow2.f32 %v501_v38  ;;  %v589_v58 = vsub.f32 %v1151_v29, %v587_v41  ;;  %v669_v60 = vsub.f32 %v1143_v22, %v1689_v45 }
  0x27   :  { %v418_v61 = vperm.slane %v1242_v49, 0  ;;  %1034 = vpow2.f32 %v580_v44  ;;  %v590_v0 = vmul.f32 %v588_v52, %v588_v52  ;;  %v1688_v2 = vperm.slane %v1123_v1, 7 }
  0x28   :  { %v363_v27 = vadd.f32 %v343_v57, %v268_v48  ;;  %v591_v10 = vmul.f32 %v589_v58, %v589_v58  ;;  %v671_v12 = vmul.f32 %v669_v60, %v669_v60  ;;  %v682_v13 = vperm.slane %v1128_v4, 7 }
  0x29   :  { %v438_v16 = vmul.f32 %v1238_v46, %v418_v61  ;;  %v592_v21 = vsub.f32 0.0, %v590_v0  ;;  %v1268_v32 = vmul.f32 3.535534, %v10_v55  ;;  %v764_v34 = vmul.f32 3.535534, %v1253_v56 }
  0x2a   :  { %v1029_v35 = vpop.eup %1028  ;;  %v593_v19 = vsub.f32 0.0, %v591_v10  ;;  %v673_v37 = vsub.f32 0.0, %v671_v12  ;;  %v683_v38 = vsub.f32 %v1143_v22, %v682_v13  ;;  %v684_v41 = vsub.f32 %v1151_v29, %v682_v13 }
  0x2b   :  { %1720 = vst [vmem:[#allocation9_spill] sm:$0xff] %v1268_v32  ;;  %v1273_v42 = vpop.eup %1030  ;;  %v458_v44 = vadd.f32 %v438_v16, %v363_v27  ;;  %v1277_v4 = vmul.f32 %v1029_v35, %v1678_v26  ;;  %v594_v48 = vmul.f32 1.442695, %v592_v21  ;;  %v1686_v52 = vperm.slane %v1268_v32, 0 }
  0x2c   :  { %1721 = vst [vmem:[#allocation10_spill] sm:$0xff] %v1273_v42  ;;  %v1280_v55 = vpop.eup %1032  ;;  %v596_v57 = vmul.f32 1.442695, %v593_v19  ;;  %v675_v58 = vmul.f32 1.442695, %v673_v37  ;;  %v685_v60 = vmul.f32 %v683_v38, %v683_v38  ;;  %v686_v0 = vmul.f32 %v684_v41, %v684_v41 }
  0x2d   :  { %v1035_v10 = vpop.eup %1034  ;;  %v513_v12 = vperm.slane %v1277_v4, 0  ;;  %1036 = vpow2.f32 %v594_v48  ;;  %v766_v27 = vsub.f32 %v1143_v22, %v1686_v52  ;;  %v1687_v13 = vperm.slane %v1253_v56, 0 }
  0x2e   :  { %v1289_v16 = vmul.f32 %v1035_v10, %v1682_v30  ;;  %1038 = vpow2.f32 %v596_v57  ;;  %v687_v21 = vsub.f32 0.0, %v685_v60  ;;  %v688_v35 = vsub.f32 0.0, %v686_v0 }
  0x2f   :  { %v533_v19 = vmul.f32 %v1273_v42, %v513_v12  ;;  %1040 = vpow2.f32 %v675_v58  ;;  %v768_v37 = vmul.f32 %v766_v27, %v766_v27  ;;  %v779_v38 = vperm.slane %v764_v34, 0 }
  0x30   :  { %v608_v41 = vperm.slane %v1289_v16, 0  ;;  %v689_v48 = vmul.f32 1.442695, %v687_v21  ;;  %v691_v26 = vmul.f32 1.442695, %v688_v35  ;;  %v1685_v23 = vperm.slane %v1268_v32, 1 }
  0x31   :  { %v553_v18 = vadd.f32 %v533_v19, %v458_v44  ;;  %v770_v8 = vsub.f32 0.0, %v768_v37  ;;  %v780_v10 = vsub.f32 %v1143_v22, %v779_v38  ;;  %v781_v57 = vsub.f32 %v1151_v29, %v779_v38 }
  0x32   :  { %1042 = vpow2.f32 %v689_v48  ;;  %v861_v60 = vsub.f32 %v1143_v22, %v1685_v23  ;;  %v1692_v58 = vperm.slane %v1253_v56, 1  ;;  %v874_v0 = vperm.slane %v764_v34, 1 }
  0x33   :  { %v1302_v27 = vpop.eup %1036  ;;  %1044 = vpow2.f32 %v691_v26  ;;  %v772_v21 = vmul.f32 1.442695, %v770_v8  ;;  %v782_v35 = vmul.f32 %v780_v10, %v780_v10  ;;  %v783_v30 = vmul.f32 %v781_v57, %v781_v57 }
  0x34   :  { %v1304_v44 = vpop.eup %1038  ;;  %v628_v19 = vmul.f32 %v1302_v27, %v608_v41  ;;  %v863_v37 = vmul.f32 %v861_v60, %v861_v60  ;;  %v875_v38 = vsub.f32 %v1143_v22, %v874_v0  ;;  %v876_v48 = vsub.f32 %v1151_v29, %v874_v0 }
  0x35   :  { %v1041_v7 = vpop.eup %1040  ;;  %1046 = vpow2.f32 %v772_v21  ;;  %v784_v6 = vsub.f32 0.0, %v782_v35  ;;  %v785_v23 = vsub.f32 0.0, %v783_v30  ;;  %v79_v26 = vmul.f32 %v1184_v43, %v58_v47 }
  0x36   :  { %v648_v8 = vadd.f32 %v628_v19, %v553_v18  ;;  %v1314_v34 = vmul.f32 %v1041_v7, %v1688_v2  ;;  %v865_v10 = vsub.f32 0.0, %v863_v37  ;;  %v877_v57 = vmul.f32 %v875_v38, %v875_v38 }
  0x37   :  { %v786_v60 = vmul.f32 1.442695, %v784_v6  ;;  %v788_v52 = vmul.f32 1.442695, %v785_v23  ;;  %v878_v22 = vmul.f32 %v876_v48, %v876_v48  ;;  %v154_v0 = vmul.f32 %v1196_v54, %v133_v59 }
  0x38   :  { %1722 = vst [vmem:[#allocation11_spill] sm:$0xff] %v1314_v34  ;;  %v1319_v21 = vpop.eup %1042  ;;  %v703_v30 = vperm.slane %v1314_v34, 0  ;;  %v867_v35 = vmul.f32 1.442695, %v865_v10  ;;  %v879_v47 = vsub.f32 0.0, %v877_v57  ;;  %v249_v7 = vmul.f32 %v1217_v5, %v228_v14 }
  0x39   :  { %v1325_v18 = vpop.eup %1044  ;;  %1048 = vpow2.f32 %v786_v60  ;;  %v880_v6 = vsub.f32 0.0, %v878_v22  ;;  %v174_v23 = vadd.f32 %v154_v0, %v79_v26  ;;  %v344_v19 = vmul.f32 %v1230_v36, %v323_v24 }
  0x3a   :  { %v723_v59 = vmul.f32 %v1319_v21, %v703_v30  ;;  %1050 = vpow2.f32 %v788_v52  ;;  %v881_v37 = vmul.f32 1.442695, %v879_v47  ;;  %v439_v38 = vmul.f32 %v1245_v53, %v418_v61 }
  0x3b   :  { %v1047_v48 = vpop.eup %1046  ;;  %1052 = vpow2.f32 %v867_v35  ;;  %v883_v14 = vmul.f32 1.442695, %v880_v6  ;;  %v269_v10 = vadd.f32 %v249_v7, %v174_v23  ;;  %v534_v26 = vmul.f32 %v1280_v55, %v513_v12 }
  0x3c   :  { %v743_v57 = vadd.f32 %v723_v59, %v648_v8  ;;  %v1339_v24 = vmul.f32 %v1047_v48, %v1687_v13  ;;  %1054 = vpow2.f32 %v881_v37  ;;  %v629_v52 = vmul.f32 %v1304_v44, %v608_v41 }
  0x3d   :  { %1056 = vpow2.f32 %v883_v14  ;;  %v364_v60 = vadd.f32 %v344_v19, %v269_v10  ;;  %v724_v61 = vmul.f32 %v1325_v18, %v703_v30  ;;  %v50_v22 = vrot.slane %v1182_v40, 1 }
  0x3e   :  { %1723 = vst [vmem:[#allocation12_spill] sm:$0xff] %v1339_v24  ;;  %v800_v0 = vperm.slane %v1339_v24, 0  ;;  %v125_v35 = vrot.slane %v1191_v51, 1  ;;  %v220_v12 = vrot.slane %v1215_v63, 1  ;;  %v315_v8 = vrot.slane %v1228_v33, 1 }
  0x3f   :  { %v1348_v47 = vpop.eup %1048  ;;  %v459_v7 = vadd.f32 %v439_v38, %v364_v60  ;;  %v59_v6 = vperm.slane %v50_v22, 0  ;;  %v410_v41 = vrot.slane %v1242_v49, 1  ;;  %v505_v23 = vrot.slane %v1277_v4, 1 }
  0x40   :  { %v1352_v19 = vpop.eup %1050  ;;  %v820_v30 = vmul.f32 %v1348_v47, %v800_v0  ;;  %v134_v59 = vperm.slane %v125_v35, 0  ;;  %v229_v37 = vperm.slane %v220_v12, 0  ;;  %v324_v48 = vperm.slane %v315_v8, 0 }
  0x41   :  { %v1053_v14 = vpop.eup %1052  ;;  %v554_v10 = vadd.f32 %v534_v26, %v459_v7  ;;  %v821_v13 = vmul.f32 %v1352_v19, %v800_v0  ;;  %v80_v2 = vmul.f32 %v1178_v39, %v59_v6  ;;  %v419_v45 = vperm.slane %v410_v41, 0 }
  0x42   :  { %v1357_v38 = vpop.eup %1054  ;;  %v840_v60 = vadd.f32 %v820_v30, %v743_v57  ;;  %v1361_v22 = vmul.f32 %v1053_v14, %v1692_v58  ;;  %v155_v28 = vmul.f32 %v1187_v50, %v134_v59  ;;  %v250_v35 = vmul.f32 %v1211_v62, %v229_v37 }
  0x43   :  { %v1365_v12 = vpop.eup %1056  ;;  %v649_v8 = vadd.f32 %v629_v52, %v554_v10  ;;  %v345_v26 = vmul.f32 %v1224_v31, %v324_v48  ;;  %v440_v0 = vmul.f32 %v1238_v46, %v419_v45  ;;  %v514_v7 = vperm.slane %v505_v23, 0 }
  0x44   :  { %1724 = vst [vmem:[#allocation13_spill] sm:$0xff] %v1361_v22  ;;  %v895_v41 = vperm.slane %v1361_v22, 0  ;;  %v175_v25 = vadd.f32 %v155_v28, %v80_v2  ;;  %v600_v57 = vrot.slane %v1289_v16, 1  ;;  %v695_v30 = vrot.slane %v1314_v34, 1 }
  0x45   :  { %v744_v14 = vadd.f32 %v724_v61, %v649_v8  ;;  %v535_v58 = vmul.f32 %v1273_v42, %v514_v7  ;;  %v792_v20 = vrot.slane %v1339_v24, 1  ;;  %v887_v17 = vrot.slane %v1361_v22, 1 }
  0x46   :  { %v915_v52 = vmul.f32 %v1357_v38, %v895_v41  ;;  %v916_v10 = vmul.f32 %v1365_v12, %v895_v41  ;;  %v270_v15 = vadd.f32 %v250_v35, %v175_v25  ;;  %v609_v23 = vperm.slane %v600_v57, 0 }
  0x47   :  { %v841_v11 = vadd.f32 %v821_v13, %v744_v14  ;;  %v704_v9 = vperm.slane %v695_v30, 0  ;;  %v801_v28 = vperm.slane %v792_v20, 0  ;;  %v896_v2 = vperm.slane %v887_v17, 0 }
  0x48   :  { %v935_v56 = vadd.f32 %v915_v52, %v840_v60  ;;  %v365_v1 = vadd.f32 %v345_v26, %v270_v15  ;;  %v630_v61 = vmul.f32 %v1302_v27, %v609_v23  ;;  %v81_v8 = vmul.f32 %v1184_v43, %v59_v6 }
  0x49   :  { %v936_v32 = vadd.f32 %v916_v10, %v841_v11  ;;  %v725_v29 = vmul.f32 %v1319_v21, %v704_v9  ;;  %v822_v3 = vmul.f32 %v1348_v47, %v801_v28  ;;  %v917_v22 = vmul.f32 %v1357_v38, %v896_v2 }
  0x4a   :  { %955 = vst [vmem:[#allocation2] sm:$0xff] %v935_v56  ;;  %v460_v25 = vadd.f32 %v440_v0, %v365_v1  ;;  %v156_v13 = vmul.f32 %v1196_v54, %v134_v59  ;;  %v251_v20 = vmul.f32 %v1217_v5, %v229_v37  ;;  %v346_v17 = vmul.f32 %v1230_v36, %v324_v48 }
  0x4b   :  { %956 = vst [vmem:[#allocation2 + $0x8] sm:$0x3] %v936_v32  ;;  %v441_v15 = vmul.f32 %v1245_v53, %v419_v45  ;;  %v536_v6 = vmul.f32 %v1280_v55, %v514_v7  ;;  %v631_v11 = vmul.f32 %v1304_v44, %v609_v23  ;;  %v726_v60 = vmul.f32 %v1325_v18, %v704_v9 }
  0x4c   :  { %v555_v35 = vadd.f32 %v535_v58, %v460_v25  ;;  %v176_v26 = vadd.f32 %v156_v13, %v81_v8  ;;  %v823_v56 = vmul.f32 %v1352_v19, %v801_v28  ;;  %v918_v1 = vmul.f32 %v1365_v12, %v896_v2 }
  0x4d   :  { %v51_v59 = vrot.slane %v1182_v40, 2  ;;  %v126_v37 = vrot.slane %v1191_v51, 2  ;;  %v221_v32 = vrot.slane %v1215_v63, 2  ;;  %v316_v45 = vrot.slane %v1228_v33, 2 }
  0x4e   :  { %v650_v48 = vadd.f32 %v630_v61, %v555_v35  ;;  %v271_v0 = vadd.f32 %v251_v20, %v176_v26  ;;  %v411_v7 = vrot.slane %v1242_v49, 2  ;;  %v506_v9 = vrot.slane %v1277_v4, 2 }
  0x4f   :  { %v60_v58 = vperm.slane %v51_v59, 0  ;;  %v135_v41 = vperm.slane %v126_v37, 0  ;;  %v230_v57 = vperm.slane %v221_v32, 0  ;;  %v325_v30 = vperm.slane %v316_v45, 0  ;;  %v1725_v45 = vld [vmem:[#allocation13_spill] sm:$0xff] }
  0x50   :  { %v745_v14 = vadd.f32 %v725_v29, %v650_v48  ;;  %v366_v52 = vadd.f32 %v346_v17, %v271_v0  ;;  %v420_v10 = vperm.slane %v411_v7, 0  ;;  %v515_v23 = vperm.slane %v506_v9, 0 }
  0x51   :  { %v82_v28 = vmul.f32 %v1178_v39, %v60_v58  ;;  %v157_v2 = vmul.f32 %v1187_v50, %v135_v41  ;;  %v252_v8 = vmul.f32 %v1211_v62, %v230_v57  ;;  %v347_v61 = vmul.f32 %v1224_v31, %v325_v30 }
  0x52   :  { %v842_v25 = vadd.f32 %v822_v3, %v745_v14  ;;  %v461_v13 = vadd.f32 %v441_v15, %v366_v52  ;;  %v442_v20 = vmul.f32 %v1238_v46, %v420_v10  ;;  %v537_v35 = vmul.f32 %v1273_v42, %v515_v23 }
  0x53   :  { %v177_v26 = vadd.f32 %v157_v2, %v82_v28  ;;  %v601_v29 = vrot.slane %v1289_v16, 2  ;;  %v696_v17 = vrot.slane %v1314_v34, 2  ;;  %v793_v59 = vrot.slane %v1339_v24, 2 }
  0x54   :  { %v937_v37 = vadd.f32 %v917_v22, %v842_v25  ;;  %v556_v32 = vadd.f32 %v536_v6, %v461_v13  ;;  %v888_v48 = vrot.slane %v1725_v45, 2  ;;  %v83_v0 = vmul.f32 %v1184_v43, %v60_v58 }
  0x55   :  { %v272_v7 = vadd.f32 %v252_v8, %v177_v26  ;;  %v610_v3 = vperm.slane %v601_v29, 0  ;;  %v705_v15 = vperm.slane %v696_v17, 0  ;;  %v802_v9 = vperm.slane %v793_v59, 0 }
  0x56   :  { %957 = vst [vmem:[#allocation2 + $0x10] sm:$0xff] %v937_v37  ;;  %v651_v14 = vadd.f32 %v631_v11, %v556_v32  ;;  %v897_v52 = vperm.slane %v888_v48, 0  ;;  %v158_v28 = vmul.f32 %v1196_v54, %v135_v41  ;;  %v253_v2 = vmul.f32 %v1217_v5, %v230_v57 }
  0x57   :  { %v367_v34 = vadd.f32 %v347_v61, %v272_v7  ;;  %v632_v24 = vmul.f32 %v1302_v27, %v610_v3  ;;  %v727_v22 = vmul.f32 %v1319_v21, %v705_v15  ;;  %v824_v6 = vmul.f32 %v1348_v47, %v802_v9 }
  0x58   :  { %v746_v25 = vadd.f32 %v726_v60, %v651_v14  ;;  %v919_v58 = vmul.f32 %v1357_v38, %v897_v52  ;;  %v178_v8 = vadd.f32 %v158_v28, %v83_v0  ;;  %v348_v13 = vmul.f32 %v1230_v36, %v325_v30 }
  0x59   :  { %v462_v26 = vadd.f32 %v442_v20, %v367_v34  ;;  %v443_v11 = vmul.f32 %v1245_v53, %v420_v10  ;;  %v538_v41 = vmul.f32 %v1280_v55, %v515_v23  ;;  %v633_v57 = vmul.f32 %v1304_v44, %v610_v3 }
  0x5a   :  { %v843_v61 = vadd.f32 %v823_v56, %v746_v25  ;;  %v273_v29 = vadd.f32 %v253_v2, %v178_v8  ;;  %v728_v17 = vmul.f32 %v1325_v18, %v705_v15  ;;  %v825_v59 = vmul.f32 %v1352_v19, %v802_v9 }
  0x5b   :  { %v557_v37 = vadd.f32 %v537_v35, %v462_v26  ;;  %v920_v60 = vmul.f32 %v1365_v12, %v897_v52  ;;  %v52_v32 = vrot.slane %v1182_v40, 3  ;;  %v127_v30 = vrot.slane %v1191_v51, 3 }
  0x5c   :  { %v938_v34 = vadd.f32 %v918_v1, %v843_v61  ;;  %v368_v20 = vadd.f32 %v348_v13, %v273_v29  ;;  %v222_v10 = vrot.slane %v1215_v63, 3  ;;  %v317_v23 = vrot.slane %v1228_v33, 3 }
  0x5d   :  { %v652_v48 = vadd.f32 %v632_v24, %v557_v37  ;;  %v61_v56 = vperm.slane %v52_v32, 0  ;;  %v136_v0 = vperm.slane %v127_v30, 0  ;;  %v412_v7 = vrot.slane %v1242_v49, 3  ;;  %v1726_v37 = vld [vmem:[#allocation11_spill] sm:$0xff]  ;;  %v1727_v30 = vld [vmem:[#allocation12_spill] sm:$0xff] }
  0x5e   :  { %958 = vst [vmem:[#allocation2 + $0x18] sm:$0x3] %v938_v34  ;;  %v463_v3 = vadd.f32 %v443_v11, %v368_v20  ;;  %v231_v35 = vperm.slane %v222_v10, 0  ;;  %v326_v15 = vperm.slane %v317_v23, 0  ;;  %v507_v9 = vrot.slane %v1277_v4, 3 }
  0x5f   :  { %v747_v14 = vadd.f32 %v727_v22, %v652_v48  ;;  %v84_v52 = vmul.f32 %v1178_v39, %v61_v56  ;;  %v159_v1 = vmul.f32 %v1187_v50, %v136_v0  ;;  %v421_v28 = vperm.slane %v412_v7, 0 }
  0x60   :  { %v558_v2 = vadd.f32 %v538_v41, %v463_v3  ;;  %v254_v25 = vmul.f32 %v1211_v62, %v231_v35  ;;  %v349_v24 = vmul.f32 %v1224_v31, %v326_v15  ;;  %v516_v8 = vperm.slane %v507_v9, 0 }
  0x61   :  { %v844_v13 = vadd.f32 %v824_v6, %v747_v14  ;;  %v179_v26 = vadd.f32 %v159_v1, %v84_v52  ;;  %v444_v11 = vmul.f32 %v1238_v46, %v421_v28  ;;  %v602_v61 = vrot.slane %v1289_v16, 3 }
  0x62   :  { %v653_v29 = vadd.f32 %v633_v57, %v558_v2  ;;  %v539_v22 = vmul.f32 %v1273_v42, %v516_v8  ;;  %v697_v32 = vrot.slane %v1726_v37, 3  ;;  %v794_v34 = vrot.slane %v1727_v30, 3 }
  0x63   :  { %v939_v20 = vadd.f32 %v919_v58, %v844_v13  ;;  %v274_v41 = vadd.f32 %v254_v25, %v179_v26  ;;  %v611_v10 = vperm.slane %v602_v61, 0  ;;  %v889_v23 = vrot.slane %v1725_v45, 3 }
  0x64   :  { %v748_v48 = vadd.f32 %v728_v17, %v653_v29  ;;  %v706_v7 = vperm.slane %v697_v32, 0  ;;  %v803_v6 = vperm.slane %v794_v34, 0  ;;  %v85_v3 = vmul.f32 %v1184_v43, %v61_v56 }
  0x65   :  { %959 = vst [vmem:[#allocation2 + $0x20] sm:$0xff] %v939_v20  ;;  %v369_v9 = vadd.f32 %v349_v24, %v274_v41  ;;  %v634_v57 = vmul.f32 %v1302_v27, %v611_v10  ;;  %v898_v14 = vperm.slane %v889_v23, 0  ;;  %v160_v52 = vmul.f32 %v1196_v54, %v136_v0 }
  0x66   :  { %v845_v1 = vadd.f32 %v825_v59, %v748_v48  ;;  %v729_v2 = vmul.f32 %v1319_v21, %v706_v7  ;;  %v826_v58 = vmul.f32 %v1348_v47, %v803_v6  ;;  %v255_v25 = vmul.f32 %v1217_v5, %v231_v35 }
  0x67   :  { %v464_v13 = vadd.f32 %v444_v11, %v369_v9  ;;  %v921_v17 = vmul.f32 %v1357_v38, %v898_v14  ;;  %v180_v26 = vadd.f32 %v160_v52, %v85_v3  ;;  %v350_v56 = vmul.f32 %v1230_v36, %v326_v15 }
  0x68   :  { %v940_v61 = vadd.f32 %v920_v60, %v845_v1  ;;  %v445_v24 = vmul.f32 %v1245_v53, %v421_v28  ;;  %v540_v29 = vmul.f32 %v1280_v55, %v516_v8  ;;  %v635_v0 = vmul.f32 %v1304_v44, %v611_v10 }
  0x69   :  { %v559_v59 = vadd.f32 %v539_v22, %v464_v13  ;;  %v275_v32 = vadd.f32 %v255_v25, %v180_v26  ;;  %v730_v34 = vmul.f32 %v1325_v18, %v706_v7  ;;  %v827_v20 = vmul.f32 %v1352_v19, %v803_v6 }
  0x6a   :  { %960 = vst [vmem:[#allocation2 + $0x28] sm:$0x3] %v940_v61  ;;  %v922_v35 = vmul.f32 %v1365_v12, %v898_v14  ;;  %v53_v11 = vrot.slane %v1182_v40, 4  ;;  %v128_v15 = vrot.slane %v1191_v51, 4  ;;  %v223_v60 = vrot.slane %v1215_v63, 4 }
  0x6b   :  { %v654_v28 = vadd.f32 %v634_v57, %v559_v59  ;;  %v370_v41 = vadd.f32 %v350_v56, %v275_v32  ;;  %v318_v8 = vrot.slane %v1228_v33, 4  ;;  %v413_v22 = vrot.slane %v1242_v49, 4 }
  0x6c   :  { %v62_v10 = vperm.slane %v53_v11, 0  ;;  %v137_v23 = vperm.slane %v128_v15, 0  ;;  %v232_v48 = vperm.slane %v223_v60, 0  ;;  %v508_v7 = vrot.slane %v1277_v4, 4 }
  0x6d   :  { %v749_v6 = vadd.f32 %v729_v2, %v654_v28  ;;  %v465_v3 = vadd.f32 %v445_v24, %v370_v41  ;;  %v327_v9 = vperm.slane %v318_v8, 0  ;;  %v422_v14 = vperm.slane %v413_v22, 0 }
  0x6e   :  { %v86_v52 = vmul.f32 %v1178_v39, %v62_v10  ;;  %v161_v1 = vmul.f32 %v1187_v50, %v137_v23  ;;  %v256_v57 = vmul.f32 %v1211_v62, %v232_v48  ;;  %v517_v25 = vperm.slane %v508_v7, 0 }
  0x6f   :  { %v846_v13 = vadd.f32 %v826_v58, %v749_v6  ;;  %v560_v26 = vadd.f32 %v540_v29, %v465_v3  ;;  %v351_v56 = vmul.f32 %v1224_v31, %v327_v9  ;;  %v446_v61 = vmul.f32 %v1238_v46, %v422_v14 }
  0x70   :  { %v181_v59 = vadd.f32 %v161_v1, %v86_v52  ;;  %v541_v32 = vmul.f32 %v1273_v42, %v517_v25  ;;  %v603_v2 = vrot.slane %v1289_v16, 4  ;;  %v698_v24 = vrot.slane %v1726_v37, 4 }
  0x71   :  { %v941_v11 = vadd.f32 %v921_v17, %v846_v13  ;;  %v655_v15 = vadd.f32 %v635_v0, %v560_v26  ;;  %v795_v60 = vrot.slane %v1727_v30, 4  ;;  %v890_v28 = vrot.slane %v1725_v45, 4 }
  0x72   :  { %v276_v41 = vadd.f32 %v256_v57, %v181_v59  ;;  %v612_v58 = vperm.slane %v603_v2, 0  ;;  %v707_v29 = vperm.slane %v698_v24, 0  ;;  %v87_v8 = vmul.f32 %v1184_v43, %v62_v10 }
  0x73   :  { %961 = vst [vmem:[#allocation2 + $0x30] sm:$0xff] %v941_v11  ;;  %v750_v22 = vadd.f32 %v730_v34, %v655_v15  ;;  %v804_v7 = vperm.slane %v795_v60, 0  ;;  %v899_v6 = vperm.slane %v890_v28, 0  ;;  %v162_v3 = vmul.f32 %v1196_v54, %v137_v23 }
  0x74   :  { %v371_v52 = vadd.f32 %v351_v56, %v276_v41  ;;  %v636_v1 = vmul.f32 %v1302_v27, %v612_v58  ;;  %v731_v17 = vmul.f32 %v1319_v21, %v707_v29  ;;  %v257_v0 = vmul.f32 %v1217_v5, %v232_v48 }
  0x75   :  { %v847_v13 = vadd.f32 %v827_v20, %v750_v22  ;;  %v828_v57 = vmul.f32 %v1348_v47, %v804_v7  ;;  %v923_v26 = vmul.f32 %v1357_v38, %v899_v6  ;;  %v182_v59 = vadd.f32 %v162_v3, %v87_v8 }
  0x76   :  { %v466_v10 = vadd.f32 %v446_v61, %v371_v52  ;;  %v352_v34 = vmul.f32 %v1230_v36, %v327_v9  ;;  %v447_v2 = vmul.f32 %v1245_v53, %v422_v14  ;;  %v542_v23 = vmul.f32 %v1280_v55, %v517_v25 }
  0x77   :  { %v942_v56 = vadd.f32 %v922_v35, %v847_v13  ;;  %v277_v24 = vadd.f32 %v257_v0, %v182_v59  ;;  %v637_v11 = vmul.f32 %v1304_v44, %v612_v58  ;;  %v732_v15 = vmul.f32 %v1325_v18, %v707_v29 }
  0x78   :  { %v561_v48 = vadd.f32 %v541_v32, %v466_v10  ;;  %v829_v20 = vmul.f32 %v1352_v19, %v804_v7  ;;  %v924_v60 = vmul.f32 %v1365_v12, %v899_v6  ;;  %v54_v28 = vrot.slane %v1182_v40, 5 }
  0x79   :  { %962 = vst [vmem:[#allocation2 + $0x38] sm:$0x3] %v942_v56  ;;  %v372_v61 = vadd.f32 %v352_v34, %v277_v24  ;;  %v129_v9 = vrot.slane %v1191_v51, 5  ;;  %v224_v14 = vrot.slane %v1215_v63, 5  ;;  %v319_v35 = vrot.slane %v1228_v33, 5 }
  0x7a   :  { %v656_v25 = vadd.f32 %v636_v1, %v561_v48  ;;  %v63_v41 = vperm.slane %v54_v28, 0  ;;  %v414_v58 = vrot.slane %v1242_v49, 5  ;;  %v509_v32 = vrot.slane %v1277_v4, 5 }
  0x7b   :  { %v467_v29 = vadd.f32 %v447_v2, %v372_v61  ;;  %v138_v8 = vperm.slane %v129_v9, 0  ;;  %v233_v22 = vperm.slane %v224_v14, 0  ;;  %v328_v7 = vperm.slane %v319_v35, 0 }
  0x7c   :  { %v751_v6 = vadd.f32 %v731_v17, %v656_v25  ;;  %v88_v3 = vmul.f32 %v1178_v39, %v63_v41  ;;  %v423_v52 = vperm.slane %v414_v58, 0  ;;  %v518_v0 = vperm.slane %v509_v32, 0 }
  0x7d   :  { %v562_v13 = vadd.f32 %v542_v23, %v467_v29  ;;  %v163_v59 = vmul.f32 %v1187_v50, %v138_v8  ;;  %v258_v10 = vmul.f32 %v1211_v62, %v233_v22  ;;  %v353_v1 = vmul.f32 %v1224_v31, %v328_v7 }
  0x7e   :  { %v848_v34 = vadd.f32 %v828_v57, %v751_v6  ;;  %v448_v56 = vmul.f32 %v1238_v46, %v423_v52  ;;  %v543_v2 = vmul.f32 %v1273_v42, %v518_v0  ;;  %v604_v24 = vrot.slane %v1289_v16, 5 }
  0x7f   :  { %v657_v48 = vadd.f32 %v637_v11, %v562_v13  ;;  %v183_v17 = vadd.f32 %v163_v59, %v88_v3  ;;  %v699_v28 = vrot.slane %v1726_v37, 5  ;;  %v796_v61 = vrot.slane %v1727_v30, 5 }
  0x80   :  { %v943_v23 = vadd.f32 %v923_v26, %v848_v34  ;;  %v613_v9 = vperm.slane %v604_v24, 0  ;;  %v891_v14 = vrot.slane %v1725_v45, 5  ;;  %v89_v35 = vmul.f32 %v1184_v43, %v63_v41 }
  0x81   :  { %v752_v25 = vadd.f32 %v732_v15, %v657_v48  ;;  %v278_v57 = vadd.f32 %v258_v10, %v183_v17  ;;  %v708_v58 = vperm.slane %v699_v28, 0  ;;  %v805_v32 = vperm.slane %v796_v61, 0 }
  0x82   :  { %963 = vst [vmem:[#allocation2 + $0x40] sm:$0xff] %v943_v23  ;;  %v638_v29 = vmul.f32 %v1302_v27, %v613_v9  ;;  %v900_v6 = vperm.slane %v891_v14, 0  ;;  %v164_v11 = vmul.f32 %v1196_v54, %v138_v8  ;;  %v259_v3 = vmul.f32 %v1217_v5, %v233_v22 }
  0x83   :  { %v849_v13 = vadd.f32 %v829_v20, %v752_v25  ;;  %v373_v59 = vadd.f32 %v353_v1, %v278_v57  ;;  %v733_v26 = vmul.f32 %v1319_v21, %v708_v58  ;;  %v830_v34 = vmul.f32 %v1348_v47, %v805_v32 }
  0x84   :  { %v925_v41 = vmul.f32 %v1357_v38, %v900_v6  ;;  %v184_v15 = vadd.f32 %v164_v11, %v89_v35  ;;  %v354_v10 = vmul.f32 %v1230_v36, %v328_v7  ;;  %v449_v24 = vmul.f32 %v1245_v53, %v423_v52 }
  0x85   :  { %v944_v48 = vadd.f32 %v924_v60, %v849_v13  ;;  %v468_v17 = vadd.f32 %v448_v56, %v373_v59  ;;  %v544_v28 = vmul.f32 %v1280_v55, %v518_v0  ;;  %v639_v8 = vmul.f32 %v1304_v44, %v613_v9 }
  0x86   :  { %v279_v22 = vadd.f32 %v259_v3, %v184_v15  ;;  %v734_v20 = vmul.f32 %v1325_v18, %v708_v58  ;;  %v831_v1 = vmul.f32 %v1352_v19, %v805_v32  ;;  %v926_v61 = vmul.f32 %v1365_v12, %v900_v6 }
  0x87   :  { %964 = vst [vmem:[#allocation2 + $0x48] sm:$0x3] %v944_v48  ;;  %v563_v23 = vadd.f32 %v543_v2, %v468_v17  ;;  %v55_v14 = vrot.slane %v1182_v40, 6  ;;  %v130_v7 = vrot.slane %v1191_v51, 6  ;;  %v225_v60 = vrot.slane %v1215_v63, 6 }
  0x88   :  { %v374_v52 = vadd.f32 %v354_v10, %v279_v22  ;;  %v320_v0 = vrot.slane %v1228_v33, 6  ;;  %v415_v56 = vrot.slane %v1242_v49, 6  ;;  %v510_v9 = vrot.slane %v1277_v4, 6 }
  0x89   :  { %v658_v35 = vadd.f32 %v638_v29, %v563_v23  ;;  %v64_v25 = vperm.slane %v55_v14, 0  ;;  %v139_v57 = vperm.slane %v130_v7, 0  ;;  %v234_v58 = vperm.slane %v225_v60, 0 }
  0x8a   :  { %v469_v32 = vadd.f32 %v449_v24, %v374_v52  ;;  %v329_v6 = vperm.slane %v320_v0, 0  ;;  %v424_v2 = vperm.slane %v415_v56, 0  ;;  %v519_v11 = vperm.slane %v510_v9, 0 }
  0x8b   :  { %v753_v3 = vadd.f32 %v733_v26, %v658_v35  ;;  %v90_v13 = vmul.f32 %v1178_v39, %v64_v25  ;;  %v165_v59 = vmul.f32 %v1187_v50, %v139_v57  ;;  %v260_v15 = vmul.f32 %v1211_v62, %v234_v58 }
  0x8c   :  { %v564_v10 = vadd.f32 %v544_v28, %v469_v32  ;;  %v355_v48 = vmul.f32 %v1224_v31, %v329_v6  ;;  %v450_v17 = vmul.f32 %v1238_v46, %v424_v2  ;;  %v545_v29 = vmul.f32 %v1273_v42, %v519_v11 }
  0x8d   :  { %v850_v22 = vadd.f32 %v830_v34, %v753_v3  ;;  %v185_v23 = vadd.f32 %v165_v59, %v90_v13  ;;  %v605_v24 = vrot.slane %v1289_v16, 6  ;;  %v700_v14 = vrot.slane %v1726_v37, 6 }
  0x8e   :  { %v659_v26 = vadd.f32 %v639_v8, %v564_v10  ;;  %v797_v7 = vrot.slane %v1727_v30, 6  ;;  %v892_v60 = vrot.slane %v1725_v45, 6  ;;  %v91_v52 = vmul.f32 %v1184_v43, %v64_v25 }
  0x8f   :  { %v945_v28 = vadd.f32 %v925_v41, %v850_v22  ;;  %v280_v0 = vadd.f32 %v260_v15, %v185_v23  ;;  %v614_v56 = vperm.slane %v605_v24, 0  ;;  %v709_v9 = vperm.slane %v700_v14, 0 }
  0x90   :  { %v754_v35 = vadd.f32 %v734_v20, %v659_v26  ;;  %v806_v32 = vperm.slane %v797_v7, 0  ;;  %v901_v42 = vperm.slane %v892_v60, 0  ;;  %v166_v34 = vmul.f32 %v1196_v54, %v139_v57 }
  0x91   :  { %965 = vst [vmem:[#allocation2 + $0x50] sm:$0xff] %v945_v28  ;;  %v375_v3 = vadd.f32 %v355_v48, %v280_v0  ;;  %v640_v13 = vmul.f32 %v1302_v27, %v614_v56  ;;  %v735_v8 = vmul.f32 %v1319_v21, %v709_v9  ;;  %v261_v59 = vmul.f32 %v1217_v5, %v234_v58 }
  0x92   :  { %v851_v10 = vadd.f32 %v831_v1, %v754_v35  ;;  %v832_v25 = vmul.f32 %v1348_v47, %v806_v32  ;;  %v927_v41 = vmul.f32 %v1357_v38, %v901_v42  ;;  %v186_v15 = vadd.f32 %v166_v34, %v91_v52 }
  0x93   :  { %v470_v22 = vadd.f32 %v450_v17, %v375_v3  ;;  %v356_v20 = vmul.f32 %v1230_v36, %v329_v6  ;;  %v451_v23 = vmul.f32 %v1245_v53, %v424_v2  ;;  %v546_v57 = vmul.f32 %v1280_v55, %v519_v11 }
  0x94   :  { %v946_v48 = vadd.f32 %v926_v61, %v851_v10  ;;  %v281_v24 = vadd.f32 %v261_v59, %v186_v15  ;;  %v641_v14 = vmul.f32 %v1304_v44, %v614_v56  ;;  %v736_v26 = vmul.f32 %v1325_v18, %v709_v9 }
  0x95   :  { %v565_v58 = vadd.f32 %v545_v29, %v470_v22  ;;  %v833_v1 = vmul.f32 %v1352_v19, %v806_v32  ;;  %v928_v7 = vmul.f32 %v1365_v12, %v901_v42  ;;  %v56_v60 = vrot.slane %v1182_v40, 7 }
  0x96   :  { %966 = vst [vmem:[#allocation2 + $0x58] sm:$0x3] %v946_v48  ;;  %v376_v17 = vadd.f32 %v356_v20, %v281_v24  ;;  %v131_v6 = vrot.slane %v1191_v51, 7  ;;  %v226_v2 = vrot.slane %v1215_v63, 7  ;;  %v321_v61 = vrot.slane %v1228_v33, 7 }
  0x97   :  { %v660_v11 = vadd.f32 %v640_v13, %v565_v58  ;;  %v65_v52 = vperm.slane %v56_v60, 0  ;;  %v416_v28 = vrot.slane %v1242_v49, 7  ;;  %v511_v29 = vrot.slane %v1277_v4, 7  ;;  %v1728_v4 = vld [vmem:[#allocation10_spill] sm:$0xff] }
  0x98   :  { %v471_v0 = vadd.f32 %v451_v23, %v376_v17  ;;  %v140_v56 = vperm.slane %v131_v6, 0  ;;  %v235_v9 = vperm.slane %v226_v2, 0  ;;  %v330_v42 = vperm.slane %v321_v61, 0 }
  0x99   :  { %v755_v35 = vadd.f32 %v735_v8, %v660_v11  ;;  %v92_v40 = vmul.f32 %v1178_v39, %v65_v52  ;;  %v425_v32 = vperm.slane %v416_v28, 0  ;;  %v520_v34 = vperm.slane %v511_v29, 0 }
  0x9a   :  { %v566_v51 = vadd.f32 %v546_v57, %v471_v0  ;;  %v167_v63 = vmul.f32 %v1187_v50, %v140_v56  ;;  %v262_v33 = vmul.f32 %v1211_v62, %v235_v9  ;;  %v357_v3 = vmul.f32 %v1224_v31, %v330_v42 }
  0x9b   :  { %v852_v13 = vadd.f32 %v832_v25, %v755_v35  ;;  %v452_v49 = vmul.f32 %v1238_v46, %v425_v32  ;;  %v547_v59 = vmul.f32 %v1728_v4, %v520_v34  ;;  %v606_v10 = vrot.slane %v1289_v16, 7 }
  0x9c   :  { %v661_v15 = vadd.f32 %v641_v14, %v566_v51  ;;  %v187_v8 = vadd.f32 %v167_v63, %v92_v40  ;;  %v701_v22 = vrot.slane %v1726_v37, 7  ;;  %v798_v20 = vrot.slane %v1727_v30, 7  ;;  %v1729_v63 = vld [vmem:[#allocation6_spill] sm:$0xff] }
  0x9d   :  { %v947_v23 = vadd.f32 %v927_v41, %v852_v13  ;;  %v615_v57 = vperm.slane %v606_v10, 0  ;;  %v893_v48 = vrot.slane %v1725_v45, 7  ;;  %v93_v24 = vmul.f32 %v1184_v43, %v65_v52 }
  0x9e   :  { %v756_v58 = vadd.f32 %v736_v26, %v661_v15  ;;  %v282_v25 = vadd.f32 %v262_v33, %v187_v8  ;;  %v710_v60 = vperm.slane %v701_v22, 0  ;;  %v807_v17 = vperm.slane %v798_v20, 0 }
  0x9f   :  { %967 = vst [vmem:[#allocation2 + $0x60] sm:$0xff] %v947_v23  ;;  %v642_v6 = vmul.f32 %v1302_v27, %v615_v57  ;;  %v902_v16 = vperm.slane %v893_v48, 0  ;;  %v168_v14 = vmul.f32 %v1196_v54, %v140_v56  ;;  %v263_v37 = vmul.f32 %v1217_v5, %v235_v9 }
  0xa0   :  { %v853_v2 = vadd.f32 %v833_v1, %v756_v58  ;;  %v377_v30 = vadd.f32 %v357_v3, %v282_v25  ;;  %v737_v41 = vmul.f32 %v1319_v21, %v710_v60  ;;  %v834_v45 = vmul.f32 %v1348_v47, %v807_v17 }
  0xa1   :  { %v929_v61 = vmul.f32 %v1357_v38, %v902_v16  ;;  %v188_v26 = vadd.f32 %v168_v14, %v93_v24  ;;  %v358_v11 = vmul.f32 %v1230_v36, %v330_v42  ;;  %v453_v52 = vmul.f32 %v1245_v53, %v425_v32  ;;  %v1731_v42 = vld [vmem:[#allocation7_spill] sm:$0xff] }
  0xa2   :  { %v948_v28 = vadd.f32 %v928_v7, %v853_v2  ;;  %v472_v29 = vadd.f32 %v452_v49, %v377_v30  ;;  %v548_v0 = vmul.f32 %v1280_v55, %v520_v34  ;;  %v643_v56 = vmul.f32 %v1304_v44, %v615_v57 }
  0xa3   :  { %v283_v9 = vadd.f32 %v263_v37, %v188_v26  ;;  %v738_v1 = vmul.f32 %v1325_v18, %v710_v60  ;;  %v835_v35 = vmul.f32 %v1352_v19, %v807_v17  ;;  %v930_v40 = vmul.f32 %v1365_v12, %v902_v16 }
  0xa4   :  { %968 = vst [vmem:[#allocation2 + $0x68] sm:$0x3] %v948_v28  ;;  %v567_v51 = vadd.f32 %v547_v59, %v472_v29  ;;  %v1730_v33 = vperm.slane %v1729_v63, 0  ;;  %v1732_v7 = vperm.slane %v1729_v63, 1  ;;  %v1733_v34 = vperm.slane %v1729_v63, 2 }
  0xa5   :  { %v378_v49 = vadd.f32 %v358_v11, %v283_v9  ;;  %v1734_v10 = vperm.slane %v1729_v63, 3  ;;  %v1735_v8 = vperm.slane %v1729_v63, 4  ;;  %v1736_v22 = vperm.slane %v1729_v63, 5 }
  0xa6   :  { %v25_v3 = vsub.f32 %v1731_v42, %v1730_v33  ;;  %v100_v32 = vsub.f32 %v1731_v42, %v1732_v7  ;;  %v195_v13 = vsub.f32 %v1731_v42, %v1733_v34  ;;  %v662_v23 = vadd.f32 %v642_v6, %v567_v51 }
  0xa7   :  { %v290_v15 = vsub.f32 %v1731_v42, %v1734_v10  ;;  %v385_v59 = vsub.f32 %v1731_v42, %v1735_v8  ;;  %v480_v20 = vsub.f32 %v1731_v42, %v1736_v22  ;;  %v473_v58 = vadd.f32 %v453_v52, %v378_v49 }
  0xa8   :  { %v27_v57 = vmul.f32 %v25_v3, %v25_v3  ;;  %v102_v48 = vmul.f32 %v100_v32, %v100_v32  ;;  %v197_v24 = vmul.f32 %v195_v13, %v195_v13  ;;  %v757_v16 = vadd.f32 %v737_v41, %v662_v23 }
  0xa9   :  { %v292_v25 = vmul.f32 %v290_v15, %v290_v15  ;;  %v387_v60 = vmul.f32 %v385_v59, %v385_v59  ;;  %v482_v17 = vmul.f32 %v480_v20, %v480_v20  ;;  %v568_v30 = vadd.f32 %v548_v0, %v473_v58 }
  0xaa   :  { %v29_v14 = vsub.f32 0.0, %v27_v57  ;;  %v104_v37 = vsub.f32 0.0, %v102_v48  ;;  %v199_v2 = vsub.f32 0.0, %v197_v24  ;;  %v854_v29 = vadd.f32 %v834_v45, %v757_v16  ;;  %v1739_v45 = vld [vmem:[#allocation9_spill] sm:$0xff] }
  0xab   :  { %v294_v26 = vsub.f32 0.0, %v292_v25  ;;  %v389_v11 = vsub.f32 0.0, %v387_v60  ;;  %v484_v28 = vsub.f32 0.0, %v482_v17  ;;  %v663_v6 = vadd.f32 %v643_v56, %v568_v30 }
  0xac   :  { %v32_v9 = vmul.f32 1.442695, %v29_v14  ;;  %v107_v33 = vmul.f32 1.442695, %v104_v37  ;;  %v202_v7 = vmul.f32 1.442695, %v199_v2  ;;  %v949_v52 = vadd.f32 %v929_v61, %v854_v29 }
  0xad   :  { %v297_v51 = vmul.f32 1.442695, %v294_v26  ;;  %v392_v3 = vmul.f32 1.442695, %v389_v11  ;;  %v487_v32 = vmul.f32 1.442695, %v484_v28  ;;  %v758_v49 = vadd.f32 %v738_v1, %v663_v6 }
  0xae   :  { %1058 = vpow2.f32 %v32_v9  ;;  %v1737_v34 = vperm.slane %v1729_v63, 6  ;;  %v1738_v13 = vperm.slane %v1729_v63, 7  ;;  %v1740_v10 = vperm.slane %v1739_v45, 0  ;;  %969 = vst [vmem:[#allocation2 + $0x70] sm:$0xff] %v949_v52 }
  0xaf   :  { %1060 = vpow2.f32 %v107_v33  ;;  %v1741_v56 = vperm.slane %v1739_v45, 1  ;;  %v855_v22 = vadd.f32 %v835_v35, %v758_v49 }
  0xb0   :  { %v575_v41 = vsub.f32 %v1731_v42, %v1737_v34  ;;  %v670_v0 = vsub.f32 %v1731_v42, %v1738_v13  ;;  %v767_v15 = vsub.f32 %v1731_v42, %v1740_v10  ;;  %1062 = vpow2.f32 %v202_v7 }
  0xb1   :  { %v862_v8 = vsub.f32 %v1731_v42, %v1741_v56  ;;  %1064 = vpow2.f32 %v297_v51  ;;  %v950_v57 = vadd.f32 %v930_v40, %v855_v22  ;;  %v1742_v42 = vld [vmem:[#allocation5_spill] sm:$0xff] }
  0xb2   :  { %v577_v61 = vmul.f32 %v575_v41, %v575_v41  ;;  %v672_v59 = vmul.f32 %v670_v0, %v670_v0  ;;  %v769_v20 = vmul.f32 %v767_v15, %v767_v15  ;;  %1066 = vpow2.f32 %v392_v3 }
  0xb3   :  { %v864_v63 = vmul.f32 %v862_v8, %v862_v8  ;;  %1068 = vpow2.f32 %v487_v32  ;;  %970 = vst [vmem:[#allocation2 + $0x78] sm:$0x3] %v950_v57  ;;  %v1743_v16 = vperm.slane %v1742_v42, 0  ;;  %v1744_v30 = vperm.slane %v1742_v42, 1 }
  0xb4   :  { %v579_v23 = vsub.f32 0.0, %v577_v61  ;;  %v674_v1 = vsub.f32 0.0, %v672_v59  ;;  %v771_v48 = vsub.f32 0.0, %v769_v20  ;;  %v1059_v58 = vpop.eup %1058  ;;  %v1745_v28 = vperm.slane %v1742_v42, 2 }
  0xb5   :  { %v866_v24 = vsub.f32 0.0, %v864_v63  ;;  %v1061_v17 = vpop.eup %1060  ;;  %v36_v14 = vmul.f32 %v1059_v58, %v1743_v16  ;;  %v1746_v7 = vperm.slane %v1742_v42, 3  ;;  %v1747_v34 = vperm.slane %v1742_v42, 4 }
  0xb6   :  { %v582_v25 = vmul.f32 1.442695, %v579_v23  ;;  %v677_v60 = vmul.f32 1.442695, %v674_v1  ;;  %v774_v37 = vmul.f32 1.442695, %v771_v48  ;;  %v1063_v2 = vpop.eup %1062  ;;  %v111_v26 = vmul.f32 %v1061_v17, %v1744_v30 }
  0xb7   :  { %v869_v35 = vmul.f32 1.442695, %v866_v24  ;;  %v1065_v11 = vpop.eup %1064  ;;  %v66_v40 = vperm.slane %v36_v14, 0  ;;  %v1607_v29 = vmul.f32 %v1063_v2, %v1745_v28  ;;  %v57_v51 = vrot.slane %v36_v14, 1  ;;  %v1751_v30 = vld [vmem:[#allocation8_spill] sm:$0xff] }
  0xb8   :  { %1070 = vpow2.f32 %v582_v25  ;;  %v1067_v9 = vpop.eup %1066  ;;  %v141_v33 = vperm.slane %v111_v26, 0  ;;  %v1611_v6 = vmul.f32 %v1065_v11, %v1746_v7  ;;  %v1748_v49 = vperm.slane %v1742_v42, 5 }
  0xb9   :  { %1072 = vpow2.f32 %v677_v60  ;;  %v1069_v3 = vpop.eup %1068  ;;  %v94_v32 = vmul.f32 %v1178_v39, %v66_v40  ;;  %v236_v52 = vperm.slane %v1607_v29, 0  ;;  %v396_v41 = vmul.f32 %v1067_v9, %v1747_v34 }
  0xba   :  { %1074 = vpow2.f32 %v774_v37  ;;  %v169_v13 = vmul.f32 %v1187_v50, %v141_v33  ;;  %v331_v0 = vperm.slane %v1611_v6, 0  ;;  %v491_v45 = vmul.f32 %v1069_v3, %v1748_v49 }
  0xbb   :  { %1076 = vpow2.f32 %v869_v35  ;;  %v95_v10 = vmul.f32 %v1184_v43, %v66_v40  ;;  %v264_v15 = vmul.f32 %v1211_v62, %v236_v52  ;;  %v426_v56 = vperm.slane %v396_v41, 0 }
  0xbc   :  { %v170_v8 = vmul.f32 %v1196_v54, %v141_v33  ;;  %v265_v61 = vmul.f32 %v1217_v5, %v236_v52  ;;  %v189_v22 = vadd.f32 %v169_v13, %v94_v32  ;;  %v359_v20 = vmul.f32 %v1224_v31, %v331_v0 }
  0xbd   :  { %v521_v63 = vperm.slane %v491_v45, 0  ;;  %v132_v23 = vrot.slane %v111_v26, 1  ;;  %v1749_v57 = vperm.slane %v1742_v42, 6  ;;  %v360_v58 = vmul.f32 %v1230_v36, %v331_v0 }
  0xbe   :  { %v1071_v59 = vpop.eup %1070  ;;  %v190_v24 = vadd.f32 %v170_v8, %v95_v10  ;;  %v284_v60 = vadd.f32 %v264_v15, %v189_v22  ;;  %v454_v17 = vmul.f32 %v1238_v46, %v426_v56  ;;  %v1750_v16 = vperm.slane %v1742_v42, 7 }
  0xbf   :  { %v1073_v1 = vpop.eup %1072  ;;  %v586_v48 = vmul.f32 %v1071_v59, %v1749_v57  ;;  %v455_v37 = vmul.f32 %v1245_v53, %v426_v56  ;;  %v1752_v26 = vperm.slane %v1751_v30, 0  ;;  %v67_v28 = vperm.slane %v57_v51, 0 }
  0xc0   :  { %v1075_v25 = vpop.eup %1074  ;;  %v681_v14 = vmul.f32 %v1073_v1, %v1750_v16  ;;  %v285_v40 = vadd.f32 %v265_v61, %v190_v24  ;;  %v379_v9 = vadd.f32 %v359_v20, %v284_v60  ;;  %v549_v33 = vmul.f32 %v1728_v4, %v521_v63 }
  0xc1   :  { %v1077_v35 = vpop.eup %1076  ;;  %v616_v2 = vperm.slane %v586_v48, 0  ;;  %v1635_v11 = vmul.f32 %v1075_v25, %v1752_v26  ;;  %v142_v3 = vperm.slane %v132_v23, 0  ;;  %v1753_v42 = vperm.slane %v1751_v30, 1 }
  0xc2   :  { %v711_v7 = vperm.slane %v681_v14, 0  ;;  %v380_v34 = vadd.f32 %v360_v58, %v285_v40  ;;  %v550_v13 = vmul.f32 %v1280_v55, %v521_v63  ;;  %v474_v0 = vadd.f32 %v454_v17, %v379_v9 }
  0xc3   :  { %v808_v32 = vperm.slane %v1635_v11, 0  ;;  %v873_v52 = vmul.f32 %v1077_v35, %v1753_v42  ;;  %v644_v49 = vmul.f32 %v1302_v27, %v616_v2  ;;  %v645_v51 = vmul.f32 %v1304_v44, %v616_v2 }
  0xc4   :  { %v739_v10 = vmul.f32 %v1319_v21, %v711_v7  ;;  %v475_v56 = vadd.f32 %v455_v37, %v380_v34  ;;  %v740_v8 = vmul.f32 %v1325_v18, %v711_v7  ;;  %v96_v61 = vmul.f32 %v1178_v39, %v67_v28 }
  0xc5   :  { %v903_v15 = vperm.slane %v873_v52, 0  ;;  %v569_v59 = vadd.f32 %v549_v33, %v474_v0  ;;  %v836_v22 = vmul.f32 %v1348_v47, %v808_v32  ;;  %v837_v20 = vmul.f32 %v1352_v19, %v808_v32 }
  0xc6   :  { %v171_v63 = vmul.f32 %v1187_v50, %v142_v3  ;;  %v570_v23 = vadd.f32 %v550_v13, %v475_v56  ;;  %v227_v1 = vrot.slane %v1607_v29, 1  ;;  %v322_v57 = vrot.slane %v1611_v6, 1 }
  0xc7   :  { %v417_v24 = vrot.slane %v396_v41, 1  ;;  %v664_v58 = vadd.f32 %v644_v49, %v569_v59  ;;  %v512_v60 = vrot.slane %v491_v45, 1  ;;  %v607_v17 = vrot.slane %v586_v48, 1 }
  0xc8   :  { %v191_v25 = vadd.f32 %v171_v63, %v96_v61  ;;  %v665_v16 = vadd.f32 %v645_v51, %v570_v23  ;;  %v237_v37 = vperm.slane %v227_v1, 0  ;;  %v332_v39 = vperm.slane %v322_v57, 0 }
  0xc9   :  { %v427_v35 = vperm.slane %v417_v24, 0  ;;  %v759_v2 = vadd.f32 %v739_v10, %v664_v58  ;;  %v931_v30 = vmul.f32 %v1357_v38, %v903_v15  ;;  %v932_v26 = vmul.f32 %v1365_v12, %v903_v15 }
  0xca   :  { %v522_v50 = vperm.slane %v512_v60, 0  ;;  %v760_v40 = vadd.f32 %v740_v8, %v665_v16  ;;  %v266_v29 = vmul.f32 %v1211_v62, %v237_v37  ;;  %v361_v6 = vmul.f32 %v1224_v31, %v332_v39 }
  0xcb   :  { %v702_v41 = vrot.slane %v681_v14, 1  ;;  %v856_v9 = vadd.f32 %v836_v22, %v759_v2  ;;  %v617_v33 = vperm.slane %v607_v17, 0  ;;  %v456_v7 = vmul.f32 %v1238_v46, %v427_v35 }
  0xcc   :  { %v857_v45 = vadd.f32 %v837_v20, %v760_v40  ;;  %v286_v48 = vadd.f32 %v266_v29, %v191_v25  ;;  %v799_v32 = vrot.slane %v1635_v11, 1  ;;  %v551_v34 = vmul.f32 %v1728_v4, %v522_v50 }
  0xcd   :  { %v951_v42 = vadd.f32 %v931_v30, %v856_v9  ;;  %v97_v13 = vmul.f32 %v1184_v43, %v67_v28  ;;  %v172_v0 = vmul.f32 %v1196_v54, %v142_v3  ;;  %v712_v10 = vperm.slane %v702_v41, 0 }
  0xce   :  { %v952_v49 = vadd.f32 %v932_v26, %v857_v45  ;;  %v381_v62 = vadd.f32 %v361_v6, %v286_v48  ;;  %v894_v31 = vrot.slane %v873_v52, 1  ;;  %v267_v51 = vmul.f32 %v1217_v5, %v237_v37 }
  0xcf   :  { %971 = vst [vmem:[#allocation2 + $0x80] sm:$0xff] %v951_v42  ;;  %v192_v14 = vadd.f32 %v172_v0, %v97_v13  ;;  %v362_v15 = vmul.f32 %v1230_v36, %v332_v39  ;;  %v646_v11 = vmul.f32 %v1302_v27, %v617_v33  ;;  %v809_v56 = vperm.slane %v799_v32, 0 }
  0xd0   :  { %972 = vst [vmem:[#allocation2 + $0x88] sm:$0x3] %v952_v49  ;;  %v476_v46 = vadd.f32 %v456_v7, %v381_v62  ;;  %v457_v43 = vmul.f32 %v1245_v53, %v427_v35  ;;  %v741_v54 = vmul.f32 %v1319_v21, %v712_v10  ;;  %v904_v3 = vperm.slane %v894_v31, 0 }
  0xd1   :  { %v287_v4 = vadd.f32 %v267_v51, %v192_v14  ;;  %v552_v52 = vmul.f32 %v1280_v55, %v522_v50  ;;  %v838_v5 = vmul.f32 %v1348_v47, %v809_v56  ;;  %v647_v36 = vmul.f32 %v1304_v44, %v617_v33 }
  0xd2   :  { %v571_v28 = vadd.f32 %v551_v34, %v476_v46  ;;  %v933_v27 = vmul.f32 %v1357_v38, %v904_v3  ;;  %v742_v63 = vmul.f32 %v1325_v18, %v712_v10  ;;  %v839_v21 = vmul.f32 %v1352_v19, %v809_v56 }
  0xd3   :  { %v382_v8 = vadd.f32 %v362_v15, %v287_v4  ;;  %v934_v55 = vmul.f32 %v1365_v12, %v904_v3 }
  0xd4   :  { %v666_v61 = vadd.f32 %v646_v11, %v571_v28 }
  0xd5   :  { %v477_v59 = vadd.f32 %v457_v43, %v382_v8 }
  0xd6   :  { %v761_v22 = vadd.f32 %v741_v54, %v666_v61 }
  0xd7   :  { %v572_v20 = vadd.f32 %v552_v52, %v477_v59 }
  0xd8   :  { %v858_v53 = vadd.f32 %v838_v5, %v761_v22 }
  0xd9   :  { %v667_v23 = vadd.f32 %v647_v36, %v572_v20 }
  0xda   :  { %v953_v1 = vadd.f32 %v933_v27, %v858_v53 }
  0xdb   :  { %v762_v57 = vadd.f32 %v742_v63, %v667_v23 }
  0xdc   :  { %973 = vst [vmem:[#allocation2 + $0x90] sm:$0xff] %v953_v1 }
  0xdd   :  { %v859_v44 = vadd.f32 %v839_v21, %v762_v57 }
  0xdf   :  { %v954_v47 = vadd.f32 %v934_v55, %v859_v44 }
  0xe1   :  { %974 = vst [vmem:[#allocation2 + $0x98] sm:$0x3] %v954_v47 }
  0xe2   :  { %987 = dma.vmem_to_hbm [thread:$0]  %s980_s14, 2560, %s982_s17, [#allocation3], %s1105_s18, %s1105_s18, %s1106_s19  }
  0xe3   :  { %1102 = dma.done.wait [#allocation3], 2560  }
  0xe4   :  { %1103 = vsyncadd [#allocation3], 4294964736 }
  0xe5   :  { %992 = vsyncpa [#allocation3], 1 }

</bundles_post_ra>
